<compile_context>
chip_gen: v7x
topology: tpu7x:2x2x1
jax: 0.10.0
libtpu: 0.0.40
codegen_flags: <defaults>
</compile_context>

<pallas_src>
import jax
import jax.numpy as jnp
import numpy as np
from jax import lax
from jax.experimental import pallas as pl
from jax.experimental.pallas import tpu as pltpu

K = 3  # conv kernel size (k=3)


def _resblock_kernel(x_ref, r_ref, w1_ref, s1_ref, b1_ref, w2_ref, s2_ref,
                     b2_ref, o_ref):
    """One batch element per grid step.

    x_ref  : (1, H, W, Cin)        unpadded NHWC activation, bf16
    r_ref  : (1, Cin, H*W)         NCHW-flat residual, f32
    w1_ref : (3*Cin, 3*Cmid)       conv1 weights, dy folded into N, bf16
    s1/b1  : (1, Cmid)             folded BN1 scale / bias (f32)
    w2_ref : (3*Cmid, 3*Cout)      conv2 weights, dy folded into N, bf16
    s2/b2  : (Cout, 1)             folded BN2 scale / bias (f32, channel-major)
    o_ref  : (1, Cout, H*W)        channel-major (NCHW-flat), lane-dense output
    """
    _, H, W, Cin = x_ref.shape
    Cmid = w1_ref.shape[1] // K
    Cout = w2_ref.shape[1] // K
    HW = H * W
    bf = jnp.bfloat16

    # ---- in-kernel 1-px zero halo for conv1 (no wrapper pad) ----
    x = x_ref[0]                                          # (H, W, Cin) bf16
    zrow = jnp.zeros((1, W, Cin), bf)
    zcol = jnp.zeros((H + 2, 1, Cin), bf)
    xp = jnp.concatenate([zrow, x, zrow], axis=0)         # (H+2, W,   Cin)
    xp = jnp.concatenate([zcol, xp, zcol], axis=1)        # (H+2, W+2, Cin)

    # ---- conv1: single im2row patch over ALL padded rows, one wide matmul ----
    patch1 = jnp.concatenate([xp[:, dx:dx + W, :] for dx in range(K)],
                             axis=-1).reshape((H + 2) * W, K * Cin)
    r1 = jnp.dot(patch1, w1_ref[...], preferred_element_type=jnp.float32)
    # sum the three dy pieces: row-shift by 0/W/2W, column-slice by Cmid
    acc1 = (r1[0:HW, 0:Cmid]
            + r1[W:HW + W, Cmid:2 * Cmid]
            + r1[2 * W:HW + 2 * W, 2 * Cmid:3 * Cmid])    # (H*W, Cmid) f32

    # ---- BN1 (folded affine) + ReLU ----
    mid = jnp.maximum(acc1 * s1_ref[0] + b1_ref[0], 0.0)

    # ---- value-level halo for conv2 ----
    mid_b = mid.astype(bf).reshape(H, W, Cmid)
    zrow2 = jnp.zeros((1, W, Cmid), bf)
    zcol2 = jnp.zeros((H + 2, 1, Cmid), bf)
    midp = jnp.concatenate([zrow2, mid_b, zrow2], axis=0)   # (H+2, W,   Cmid)
    midp = jnp.concatenate([zcol2, midp, zcol2], axis=1)    # (H+2, W+2, Cmid)

    # ---- conv2: same fused single-matmul structure ----
    patch2 = jnp.concatenate([midp[:, dx:dx + W, :] for dx in range(K)],
                             axis=-1).reshape((H + 2) * W, K * Cmid)
    r2 = jnp.dot(patch2, w2_ref[...], preferred_element_type=jnp.float32)
    acc2 = (r2[0:HW, 0:Cout]
            + r2[W:HW + W, Cout:2 * Cout]
            + r2[2 * W:HW + 2 * W, 2 * Cout:3 * Cout])    # (H*W, Cout) f32

    # ---- lane-dense epilogue: transpose first, then BN2 + residual on the
    # (Cout, H*W) channel-major value (residual is already NCHW-flat). ----
    out_cm = acc2.T                                        # (Cout, H*W) f32
    out_cm = out_cm * s2_ref[...] + b2_ref[...] + r_ref[0]
    o_ref[0] = out_cm.astype(o_ref.dtype)


@jax.jit
def residual_block3_pallas(x_nchw, w1, s1, b1, w2, s2, b2):
    """x_nchw: (N, C, H, W) f32; w*: (3,3,Cin,Cout) HWIO f32; s*/b*: (C,)."""
    N, Cin, H, W = x_nchw.shape
    Cmid = w1.shape[3]
    Cout = w2.shape[3]
    assert Cout == Cin, "residual add requires Cout == Cin"

    # Activation in bf16 NHWC (channels on lanes); residual stays f32 and is a
    # free metadata reshape of the original NCHW tensor (no transpose).
    x_nhwc = jnp.transpose(x_nchw, (0, 2, 3, 1)).astype(jnp.bfloat16)
    x_resid = x_nchw.reshape(N, Cin, H * W)

    # Weights: fold the dy tap into the matmul N dim.  Layout:
    #   W_big[dx*Cin + ci, dy*Cout + co] = w[dy, dx, ci, co]
    w1_big = jnp.transpose(w1, (1, 2, 0, 3)).reshape(K * Cin,
                                                     K * Cmid).astype(jnp.bfloat16)
    w2_big = jnp.transpose(w2, (1, 2, 0, 3)).reshape(K * Cmid,
                                                     K * Cout).astype(jnp.bfloat16)

    s1_r = s1.reshape(1, Cmid)
    b1_r = b1.reshape(1, Cmid)
    s2_r = s2.reshape(Cout, 1)   # channel-major for the post-transpose epilogue
    b2_r = b2.reshape(Cout, 1)

    out_flat = pl.pallas_call(
        _resblock_kernel,
        out_shape=jax.ShapeDtypeStruct((N, Cout, H * W), jnp.float32),
        grid_spec=pltpu.PrefetchScalarGridSpec(
            num_scalar_prefetch=0,
            grid=(N,),
            in_specs=[
                pl.BlockSpec((1, H, W, Cin), lambda b: (b, 0, 0, 0)),
                pl.BlockSpec((1, Cin, H * W), lambda b: (b, 0, 0)),
                pl.BlockSpec((K * Cin, K * Cmid), lambda b: (0, 0)),
                pl.BlockSpec((1, Cmid), lambda b: (0, 0)),
                pl.BlockSpec((1, Cmid), lambda b: (0, 0)),
                pl.BlockSpec((K * Cmid, K * Cout), lambda b: (0, 0)),
                pl.BlockSpec((Cout, 1), lambda b: (0, 0)),
                pl.BlockSpec((Cout, 1), lambda b: (0, 0)),
            ],
            out_specs=pl.BlockSpec((1, Cout, H * W), lambda b: (b, 0, 0)),
        ),
        compiler_params=pltpu.CompilerParams(
            dimension_semantics=("parallel",)),
    )(x_nhwc, x_resid, w1_big, s1_r, b1_r, w2_big, s2_r, b2_r)

    # (N, Cout, H*W) is already NCHW-flat: free metadata reshape, no transpose.
    return out_flat.reshape(N, Cout, H, W)


def _reference(x_nchw, w1, s1, b1, w2, s2, b2):
    """Pure-JAX reference mirroring the kernel's bf16-operand / f32-accum math."""
    x = jnp.transpose(x_nchw, (0, 2, 3, 1))
    dn = ("NHWC", "HWIO", "NHWC")
    bf = jnp.bfloat16
    y = lax.conv_general_dilated(x.astype(bf), w1.astype(bf), (1, 1), "SAME",
                                 dimension_numbers=dn,
                                 preferred_element_type=jnp.float32)
    y = jnp.maximum(y * s1.reshape(1, 1, 1, -1) + b1.reshape(1, 1, 1, -1), 0.0)
    y = lax.conv_general_dilated(y.astype(bf), w2.astype(bf), (1, 1), "SAME",
                                 dimension_numbers=dn,
                                 preferred_element_type=jnp.float32)
    y = y * s2.reshape(1, 1, 1, -1) + b2.reshape(1, 1, 1, -1) + x
    return jnp.transpose(y, (0, 3, 1, 2))


if __name__ == "__main__":
    # Small, module-consistent shapes: batch=2, channels=4, spatial=16.
    N, C, H, W = 2, 4, 16, 16

    key = jax.random.PRNGKey(0)
    kx, kw1, kw2, kg1, kb1, kg2, kb2 = jax.random.split(key, 7)

    x = jax.random.normal(kx, (N, C, H, W), jnp.float32)

    # Conv weights in HWIO layout, Kaiming-ish scale (deterministic).
    fan_in = C * K * K
    w1 = jax.random.normal(kw1, (K, K, C, C), jnp.float32) / np.sqrt(fan_in)
    w2 = jax.random.normal(kw2, (K, K, C, C), jnp.float32) / np.sqrt(fan_in)

    # BatchNorm folded to per-channel affine: scale = gamma / sqrt(var + eps),
    # bias = beta - mean * scale, with running_mean=0, running_var=1 at init.
    eps = 1e-5
    gamma1 = 1.0 + 0.1 * jax.random.normal(kg1, (C,), jnp.float32)
    beta1 = 0.1 * jax.random.normal(kb1, (C,), jnp.float32)
    gamma2 = 1.0 + 0.1 * jax.random.normal(kg2, (C,), jnp.float32)
    beta2 = 0.1 * jax.random.normal(kb2, (C,), jnp.float32)
    s1 = gamma1 / jnp.sqrt(1.0 + eps)
    b1 = beta1
    s2 = gamma2 / jnp.sqrt(1.0 + eps)
    b2 = beta2

    out = residual_block3_pallas(x, w1, s1, b1, w2, s2, b2)
    out = jax.block_until_ready(out)

    ref = jax.block_until_ready(_reference(x, w1, s1, b1, w2, s2, b2))
    # Tolerance sized for bf16-operand / f32-accumulate matmuls (accumulation
    # order differs between the MXU kernel and XLA's conv).
    np.testing.assert_allclose(np.asarray(out), np.asarray(ref),
                               rtol=5e-3, atol=5e-3)

    print("KERNEL_OK")
</pallas_src>

<mosaic_0001>
module attributes {stable_mosaic.version = 11 : i64} {
  func.func @_resblock_kernel(%arg0: i32, %arg1: memref<1x16x16x4xbf16, #tpu.memory_space<vmem>>, %arg2: memref<1x4x256xf32, #tpu.memory_space<vmem>>, %arg3: memref<12x12xbf16, #tpu.memory_space<vmem>>, %arg4: memref<1x4xf32, #tpu.memory_space<vmem>>, %arg5: memref<1x4xf32, #tpu.memory_space<vmem>>, %arg6: memref<12x12xbf16, #tpu.memory_space<vmem>>, %arg7: memref<4x1xf32, #tpu.memory_space<vmem>>, %arg8: memref<4x1xf32, #tpu.memory_space<vmem>>, %arg9: memref<1x4x256xf32, #tpu.memory_space<vmem>>) attributes {dimension_semantics = [#tpu.dimension_semantics<parallel>], iteration_bounds = array<i64: 2>, scalar_prefetch = 0 : i64, scratch_operands = 0 : i64, tpu.core_type = #tpu.core_type<tc>, window_params = [{transform_indices = @transform_0, window_bounds = array<i64: 1, 16, 16, 4>}, {transform_indices = @transform_1, window_bounds = array<i64: 1, 4, 256>}, {pipeline_mode = #tpu.pipeline_mode<synchronous>, transform_indices = @transform_2, window_bounds = array<i64: 12, 12>}, {pipeline_mode = #tpu.pipeline_mode<synchronous>, transform_indices = @transform_3, window_bounds = array<i64: 1, 4>}, {pipeline_mode = #tpu.pipeline_mode<synchronous>, transform_indices = @transform_4, window_bounds = array<i64: 1, 4>}, {pipeline_mode = #tpu.pipeline_mode<synchronous>, transform_indices = @transform_5, window_bounds = array<i64: 12, 12>}, {pipeline_mode = #tpu.pipeline_mode<synchronous>, transform_indices = @transform_6, window_bounds = array<i64: 4, 1>}, {pipeline_mode = #tpu.pipeline_mode<synchronous>, transform_indices = @transform_7, window_bounds = array<i64: 4, 1>}, {transform_indices = @transform_8, window_bounds = array<i64: 1, 4, 256>}]} {
    %c0 = arith.constant 0 : index
    %c0_0 = arith.constant 0 : index
    %c0_1 = arith.constant 0 : index
    %c0_2 = arith.constant 0 : index
    %0 = vector.load %arg1[%c0, %c0_0, %c0_1, %c0_2] : memref<1x16x16x4xbf16, #tpu.memory_space<vmem>>, vector<1x16x16x4xbf16>
    %1 = vector.shape_cast %0 : vector<1x16x16x4xbf16> to vector<16x16x4xbf16>
    %cst = arith.constant 0.000000e+00 : bf16
    %2 = vector.broadcast %cst : bf16 to vector<1x16x4xbf16>
    %cst_3 = arith.constant 0.000000e+00 : bf16
    %3 = vector.broadcast %cst_3 : bf16 to vector<18x1x4xbf16>
    %4 = tpu.concatenate %2, %1, %2 in 0 : vector<1x16x4xbf16>, vector<16x16x4xbf16>, vector<1x16x4xbf16> -> vector<18x16x4xbf16>
    %5 = tpu.concatenate %3, %4, %3 in 1 : vector<18x1x4xbf16>, vector<18x16x4xbf16>, vector<18x1x4xbf16> -> vector<18x18x4xbf16>
    %6 = vector.extract_strided_slice %5 {offsets = [0, 0, 0], sizes = [18, 16, 4], strides = [1, 1, 1]} : vector<18x18x4xbf16> to vector<18x16x4xbf16>
    %7 = vector.extract_strided_slice %5 {offsets = [0, 1, 0], sizes = [18, 16, 4], strides = [1, 1, 1]} : vector<18x18x4xbf16> to vector<18x16x4xbf16>
    %8 = vector.extract_strided_slice %5 {offsets = [0, 2, 0], sizes = [18, 16, 4], strides = [1, 1, 1]} : vector<18x18x4xbf16> to vector<18x16x4xbf16>
    %9 = tpu.concatenate %6, %7, %8 in 2 : vector<18x16x4xbf16>, vector<18x16x4xbf16>, vector<18x16x4xbf16> -> vector<18x16x12xbf16>
    %10 = vector.shape_cast %9 : vector<18x16x12xbf16> to vector<288x12xbf16>
    %c0_4 = arith.constant 0 : index
    %c0_5 = arith.constant 0 : index
    %11 = vector.load %arg3[%c0_4, %c0_5] : memref<12x12xbf16, #tpu.memory_space<vmem>>, vector<12x12xbf16>
    %cst_6 = arith.constant dense<0.000000e+00> : vector<288x12xf32>
    %12 = tpu.matmul %10, %11, %cst_6 {dimension_numbers = #tpu.dot_dimension_numbers<[1], [0], [0], [1], [0, 0, 1, 1], [], []>} : vector<288x12xbf16>, vector<12x12xbf16>, vector<288x12xf32> -> vector<288x12xf32>
    %13 = vector.extract_strided_slice %12 {offsets = [0, 0], sizes = [256, 4], strides = [1, 1]} : vector<288x12xf32> to vector<256x4xf32>
    %14 = vector.extract_strided_slice %12 {offsets = [16, 4], sizes = [256, 4], strides = [1, 1]} : vector<288x12xf32> to vector<256x4xf32>
    %15 = arith.addf %13, %14 : vector<256x4xf32>
    %16 = vector.extract_strided_slice %12 {offsets = [32, 8], sizes = [256, 4], strides = [1, 1]} : vector<288x12xf32> to vector<256x4xf32>
    %17 = arith.addf %15, %16 : vector<256x4xf32>
    %c0_7 = arith.constant 0 : index
    %c0_8 = arith.constant 0 : index
    %18 = vector.load %arg4[%c0_7, %c0_8] : memref<1x4xf32, #tpu.memory_space<vmem>>, vector<1x4xf32>
    %19 = vector.shape_cast %18 : vector<1x4xf32> to vector<4xf32>
    %20 = vector.shape_cast %19 : vector<4xf32> to vector<1x4xf32>
    %21 = vector.broadcast %20 : vector<1x4xf32> to vector<256x4xf32>
    %22 = arith.mulf %17, %21 : vector<256x4xf32>
    %c0_9 = arith.constant 0 : index
    %c0_10 = arith.constant 0 : index
    %23 = vector.load %arg5[%c0_9, %c0_10] : memref<1x4xf32, #tpu.memory_space<vmem>>, vector<1x4xf32>
    %24 = vector.shape_cast %23 : vector<1x4xf32> to vector<4xf32>
    %25 = vector.shape_cast %24 : vector<4xf32> to vector<1x4xf32>
    %26 = vector.broadcast %25 : vector<1x4xf32> to vector<256x4xf32>
    %27 = arith.addf %22, %26 : vector<256x4xf32>
    %cst_11 = arith.constant 0.000000e+00 : f32
    %28 = vector.broadcast %cst_11 : f32 to vector<256x4xf32>
    %29 = arith.maximumf %27, %28 : vector<256x4xf32>
    %30 = arith.truncf %29 : vector<256x4xf32> to vector<256x4xbf16>
    %31 = vector.shape_cast %30 : vector<256x4xbf16> to vector<16x16x4xbf16>
    %cst_12 = arith.constant 0.000000e+00 : bf16
    %32 = vector.broadcast %cst_12 : bf16 to vector<1x16x4xbf16>
    %cst_13 = arith.constant 0.000000e+00 : bf16
    %33 = vector.broadcast %cst_13 : bf16 to vector<18x1x4xbf16>
    %34 = tpu.concatenate %32, %31, %32 in 0 : vector<1x16x4xbf16>, vector<16x16x4xbf16>, vector<1x16x4xbf16> -> vector<18x16x4xbf16>
    %35 = tpu.concatenate %33, %34, %33 in 1 : vector<18x1x4xbf16>, vector<18x16x4xbf16>, vector<18x1x4xbf16> -> vector<18x18x4xbf16>
    %36 = vector.extract_strided_slice %35 {offsets = [0, 0, 0], sizes = [18, 16, 4], strides = [1, 1, 1]} : vector<18x18x4xbf16> to vector<18x16x4xbf16>
    %37 = vector.extract_strided_slice %35 {offsets = [0, 1, 0], sizes = [18, 16, 4], strides = [1, 1, 1]} : vector<18x18x4xbf16> to vector<18x16x4xbf16>
    %38 = vector.extract_strided_slice %35 {offsets = [0, 2, 0], sizes = [18, 16, 4], strides = [1, 1, 1]} : vector<18x18x4xbf16> to vector<18x16x4xbf16>
    %39 = tpu.concatenate %36, %37, %38 in 2 : vector<18x16x4xbf16>, vector<18x16x4xbf16>, vector<18x16x4xbf16> -> vector<18x16x12xbf16>
    %40 = vector.shape_cast %39 : vector<18x16x12xbf16> to vector<288x12xbf16>
    %c0_14 = arith.constant 0 : index
    %c0_15 = arith.constant 0 : index
    %41 = vector.load %arg6[%c0_14, %c0_15] : memref<12x12xbf16, #tpu.memory_space<vmem>>, vector<12x12xbf16>
    %cst_16 = arith.constant dense<0.000000e+00> : vector<288x12xf32>
    %42 = tpu.matmul %40, %41, %cst_16 {dimension_numbers = #tpu.dot_dimension_numbers<[1], [0], [0], [1], [0, 0, 1, 1], [], []>} : vector<288x12xbf16>, vector<12x12xbf16>, vector<288x12xf32> -> vector<288x12xf32>
    %43 = vector.extract_strided_slice %42 {offsets = [0, 0], sizes = [256, 4], strides = [1, 1]} : vector<288x12xf32> to vector<256x4xf32>
    %44 = vector.extract_strided_slice %42 {offsets = [16, 4], sizes = [256, 4], strides = [1, 1]} : vector<288x12xf32> to vector<256x4xf32>
    %45 = arith.addf %43, %44 : vector<256x4xf32>
    %46 = vector.extract_strided_slice %42 {offsets = [32, 8], sizes = [256, 4], strides = [1, 1]} : vector<288x12xf32> to vector<256x4xf32>
    %47 = arith.addf %45, %46 : vector<256x4xf32>
    %48 = tpu.transpose %47, [1, 0] : vector<256x4xf32> -> vector<4x256xf32>
    %c0_17 = arith.constant 0 : index
    %c0_18 = arith.constant 0 : index
    %49 = vector.load %arg7[%c0_17, %c0_18] : memref<4x1xf32, #tpu.memory_space<vmem>>, vector<4x1xf32>
    %50 = vector.broadcast %49 : vector<4x1xf32> to vector<4x256xf32>
    %51 = arith.mulf %48, %50 : vector<4x256xf32>
    %c0_19 = arith.constant 0 : index
    %c0_20 = arith.constant 0 : index
    %52 = vector.load %arg8[%c0_19, %c0_20] : memref<4x1xf32, #tpu.memory_space<vmem>>, vector<4x1xf32>
    %53 = vector.broadcast %52 : vector<4x1xf32> to vector<4x256xf32>
    %54 = arith.addf %51, %53 : vector<4x256xf32>
    %c0_21 = arith.constant 0 : index
    %c0_22 = arith.constant 0 : index
    %c0_23 = arith.constant 0 : index
    %55 = vector.load %arg2[%c0_21, %c0_22, %c0_23] : memref<1x4x256xf32, #tpu.memory_space<vmem>>, vector<1x4x256xf32>
    %56 = vector.shape_cast %55 : vector<1x4x256xf32> to vector<4x256xf32>
    %57 = arith.addf %54, %56 : vector<4x256xf32>
    %c0_24 = arith.constant 0 : index
    %c0_25 = arith.constant 0 : index
    %c0_26 = arith.constant 0 : index
    %58 = vector.load %arg9[%c0_24, %c0_25, %c0_26] : memref<1x4x256xf32, #tpu.memory_space<vmem>>, vector<1x4x256xf32>
    %59 = vector.shape_cast %58 : vector<1x4x256xf32> to vector<4x256xf32>
    %60 = vector.shape_cast %57 : vector<4x256xf32> to vector<1x4x256xf32>
    tpu.vector_store %arg9[%c0_24, %c0_25, %c0_26], %60 {strides = array<i32>} : memref<1x4x256xf32, #tpu.memory_space<vmem>>, vector<1x4x256xf32>,
    return
  }
  func.func @transform_0(%arg0: i32) -> (i32, i32, i32, i32) {
    %c0_i32 = arith.constant 0 : i32
    %c0_i32_0 = arith.constant 0 : i32
    %c0_i32_1 = arith.constant 0 : i32
    %c0_i32_2 = arith.constant 0 : i32
    return %arg0, %c0_i32, %c0_i32_0, %c0_i32_1 : i32, i32, i32, i32
  }
  func.func @transform_1(%arg0: i32) -> (i32, i32, i32) {
    %c0_i32 = arith.constant 0 : i32
    %c0_i32_0 = arith.constant 0 : i32
    %c0_i32_1 = arith.constant 0 : i32
    return %arg0, %c0_i32, %c0_i32_0 : i32, i32, i32
  }
  func.func @transform_2(%arg0: i32) -> (i32, i32) {
    %c0_i32 = arith.constant 0 : i32
    %c0_i32_0 = arith.constant 0 : i32
    %c0_i32_1 = arith.constant 0 : i32
    return %c0_i32, %c0_i32_0 : i32, i32
  }
  func.func @transform_3(%arg0: i32) -> (i32, i32) {
    %c0_i32 = arith.constant 0 : i32
    %c0_i32_0 = arith.constant 0 : i32
    %c0_i32_1 = arith.constant 0 : i32
    return %c0_i32, %c0_i32_0 : i32, i32
  }
  func.func @transform_4(%arg0: i32) -> (i32, i32) {
    %c0_i32 = arith.constant 0 : i32
    %c0_i32_0 = arith.constant 0 : i32
    %c0_i32_1 = arith.constant 0 : i32
    return %c0_i32, %c0_i32_0 : i32, i32
  }
  func.func @transform_5(%arg0: i32) -> (i32, i32) {
    %c0_i32 = arith.constant 0 : i32
    %c0_i32_0 = arith.constant 0 : i32
    %c0_i32_1 = arith.constant 0 : i32
    return %c0_i32, %c0_i32_0 : i32, i32
  }
  func.func @transform_6(%arg0: i32) -> (i32, i32) {
    %c0_i32 = arith.constant 0 : i32
    %c0_i32_0 = arith.constant 0 : i32
    %c0_i32_1 = arith.constant 0 : i32
    return %c0_i32, %c0_i32_0 : i32, i32
  }
  func.func @transform_7(%arg0: i32) -> (i32, i32) {
    %c0_i32 = arith.constant 0 : i32
    %c0_i32_0 = arith.constant 0 : i32
    %c0_i32_1 = arith.constant 0 : i32
    return %c0_i32, %c0_i32_0 : i32, i32
  }
  func.func @transform_8(%arg0: i32) -> (i32, i32, i32) {
    %c0_i32 = arith.constant 0 : i32
    %c0_i32_0 = arith.constant 0 : i32
    %c0_i32_1 = arith.constant 0 : i32
    return %arg0, %c0_i32, %c0_i32_0 : i32, i32, i32
  }
}

</mosaic_0001>

<bundles_post_ra>
// kernel: residual_block3_pallas.1
= control target key start
LH: loop header
LB: loop body
LE: loop exit
PB: predicated region body
PF: predicated region fallthrough
CT: control target
= control target key end

     0   :  { %s3220_s27 = smov 0   ;;  %s4416_s0 = inlined_call_operand.vmem [shape: bf16[2,16,16,4], index: 0, kind: input, shape index: {}]   ;;  %s4417_s1 = inlined_call_operand.vmem [shape: f32[2,4,256], index: 1, kind: input, shape index: {}]   ;;  %s4418_s2 = inlined_call_operand.vmem [shape: bf16[12,12], index: 2, kind: input, shape index: {}]   ;;  %s4419_s3 = inlined_call_operand.vmem [shape: f32[1,4], index: 3, kind: input, shape index: {}]   ;;  %s4420_s4 = inlined_call_operand.vmem [shape: f32[1,4], index: 4, kind: input, shape index: {}]   ;;  %s4421_s5 = inlined_call_operand.vmem [shape: bf16[12,12], index: 5, kind: input, shape index: {}]   ;;  %s4422_s6 = inlined_call_operand.vmem [shape: f32[4,1], index: 6, kind: input, shape index: {}]   ;;  %s4423_s7 = inlined_call_operand.vmem [shape: f32[4,1], index: 7, kind: input, shape index: {}]   ;;  %s4424_s8 = inlined_call_operand.vmem [shape: f32[2,4,256], index: 8, kind: output, shape index: {}]  }
   0x1 LB: > { %s2940_s28 = sadd.s32 4294967295, %s3168_s27   ;;  %p2944_p0 = scmp.ge.s32.totalorder %s3168_s27, 1  ;;  %s3168_s27 = sphi %s3220_s27, %s18_s27  }
   0x2   : > { %p272_p1 = scmp.lt.s32.totalorder %s3168_s27, 3 }
   0x4   : > { %p273_p2 = pnand %p2944_p0, %p272_p1 }
   0x6   : > { %276 = sbr.rel (%p273_p2) target bundleno = 1198 (0x4ae), region = 52 }
   0xd   : > { %vm592_vm0 = vcmask 1040384   ;;  %vm593_vm1 = vsmask.f32 256  ;;  %v4425_v0 = vmov 0   ;;  %p311_p3 = scmp.lt.s32.totalorder %s2940_s28, 1  ;;  %vm902_vm3 = vcmask 1046528  }
   0xe   : > { %v442_v1 = vrot.slane %v4425_v0, 7  ;;  %vm3229_vm2 = vmand %vm592_vm0, %vm593_vm1  ;;  %3141 = vset.pattern.permute.xlu1 %v4425_v0  ;;  %v3159_v10 = vld [vmem:[%s4418_s2] sm:$0x3f]   ;;  %vm1100_vm4 = vcmask 1045504   ;;  %vm629_vm5 = vsmask.f32 7424 }
   0xf   : > { %s4439_s28 = smov (!%p311_p3, %s2940_s28), 1  ;;  %s3171_s13 = smov 8   ;;  %3126 = vmatprep.subr.msk.bf16.mxu0 %vm1100_vm4, %v3159_v10  ;;  %v1102_v17 = vsel %vm1100_vm4, %v3159_v10, 0  ;;  %vm988_vm6 = vcmask 31744   ;;  %vm1023_vm7 = vcmask 64512   ;;  %vm1065_vm8 = vcmask 97280  }
  0x10   : > { %v3236_v3 = vsel %vm3229_vm2, 0, %v442_v1  ;;  %v612_v4 = vsel %vm3229_vm2, %v442_v1, 0  ;;  %s3009_s29 = sshll.u32 %s4439_s28, 7  ;;  %3051 = vmatpush3.bf16.msra.mxu0 %v1102_v17  ;;  %s3172_s14 = smov 4  }
  0x11   : > { %v903_v5 = vrot.slane %v3236_v3, 1  ;;  %v904_v6 = vrot.slane %v612_v4, 1  ;;  %v631_v7 = vshrl.u32 %v3236_v3, 16  ;;  %v633_v8 = vshll.u32 %v3236_v3, 16  ;;  %s3253_s12 = scalar_lea.vmem %s4416_s0, %s3009_s29  ;;  %s3173_s15 = smov 124  }
  0x12   : > { %v638_v9 = vshll.u32 %v612_v4, 16  ;;  %v3143_v14 = vld [vmem:[%s3253_s12] sm:$0xff]   ;;  %v3144_v16 = vld [vmem:[%s3253_s12 + $0x10] sm:$0xff]   ;;  %v3145_v23 = vld [vmem:[%s3253_s12 + $0x8] sm:$0xff]   ;;  %s3174_s16 = smov 120   ;;  %s3010_s29 = sshll.u32 %s4439_s28, 3 }
  0x13   : > { %v905_v11 = vsel %vm902_vm3, %v903_v5, %v904_v6  ;;  %v635_v12 = vrot.slane %v633_v8, 1  ;;  %v447_v18 = vshrl.u32 %v3143_v14, 16  ;;  %v450_v19 = vshll.u32 %v3143_v14, 16  ;;  %v3146_v24 = vld [vmem:[%s3253_s12 + $0x18] sm:$0xff]   ;;  %v3147_v26 = vld [vmem:[%s3253_s12 + $0x20] sm:$0xff]   ;;  %s320_s10 = scalar_lea.vmem %s4417_s1, %s3010_s29 }
  0x14   : > { %954 = vrot.lane.b32.xlu1 %v905_v11, %s3171_s13  ;;  %v640_v13 = vrot.slane %v638_v9, 1  ;;  %v461_v21 = vshrl.u32 %v3144_v16, 16  ;;  %v464_v22 = vshll.u32 %v3144_v16, 16  ;;  %v454_v28 = vshrl.u32 %v3145_v23, 16 }
  0x15   : > { %v636_v15 = vor.u32 %v635_v12, %v631_v7  ;;  %v449_v25 = vrot.slane %v447_v18, 7  ;;  %v457_v29 = vshll.u32 %v3145_v23, 16  ;;  %v468_v30 = vshrl.u32 %v3146_v24, 16  ;;  %v3148_v18 = vld [vmem:[%s3253_s12 + $0x28] sm:$0xff]  }
  0x16   : > { %v463_v27 = vrot.slane %v461_v21, 7  ;;  %v471_v33 = vshll.u32 %v3146_v24, 16  ;;  %v475_v34 = vshrl.u32 %v3147_v26, 16  ;;  %v456_v41 = vrot.slane %v454_v28, 7  ;;  %v3150_v24 = vld [vmem:[%s3253_s12 + $0x38] sm:$0xff]  }
  0x17   : > { %v641_v20 = vsel %vm629_vm5, %v636_v15, %v640_v13  ;;  %v452_v31 = vor.u32 %v450_v19, %v449_v25  ;;  %v613_v32 = vsel %vm3229_vm2, %v449_v25, 0  ;;  %v470_v5 = vrot.slane %v468_v30, 7  ;;  %v3149_v19 = vld [vmem:[%s3253_s12 + $0x30] sm:$0xff]  }
  0x18   : > { %834 = vrot.lane.b32.xlu0 %v641_v20, %s3172_s14  ;;  %v907_v35 = vrot.slane %v613_v32, 1  ;;  %v650_v36 = vshll.u32 %v613_v32, 16  ;;  %v466_v37 = vor.u32 %v464_v22, %v463_v27  ;;  %v615_v38 = vsel %vm3229_vm2, %v463_v27, 0 }
  0x19   : > { %v3271_v39 = vsel %vm3229_vm2, 0, %v452_v31  ;;  %v674_v40 = vshll.u32 %v615_v38, 16  ;;  %v913_v42 = vrot.slane %v615_v38, 1  ;;  %v459_v49 = vor.u32 %v457_v29, %v456_v41  ;;  %v3315_v29 = vld [vmem:[%s3253_s12 + $0x40] sm:$0xff]  }
  0x1a   : > { %v906_v43 = vrot.slane %v3271_v39, 1  ;;  %v643_v44 = vshrl.u32 %v3271_v39, 16  ;;  %v645_v45 = vshll.u32 %v3271_v39, 16  ;;  %v652_v46 = vrot.slane %v650_v36, 1 }
  0x1b   : > { %v3278_v47 = vsel %vm3229_vm2, 0, %v466_v37  ;;  %v676_v48 = vrot.slane %v674_v40, 1  ;;  %v614_v50 = vsel %vm3229_vm2, %v456_v41, 0  ;;  %v3288_v55 = vsel %vm3229_vm2, 0, %v459_v49 }
  0x1c   : > { %v908_v51 = vsel %vm902_vm3, %v906_v43, %v907_v35  ;;  %v647_v52 = vrot.slane %v645_v45, 1  ;;  %v667_v53 = vshrl.u32 %v3278_v47, 16  ;;  %v669_v54 = vshll.u32 %v3278_v47, 16 }
  0x1d   : > { %956 = vrot.lane.b32.xlu1 %v908_v51, %s3171_s13  ;;  %v662_v56 = vshll.u32 %v614_v50, 16  ;;  %v912_v57 = vrot.slane %v3278_v47, 1  ;;  %v910_v58 = vrot.slane %v614_v50, 1  ;;  %v655_v61 = vshrl.u32 %v3288_v55, 16 }
  0x1e   : > { %v648_v59 = vor.u32 %v647_v52, %v643_v44  ;;  %v671_v60 = vrot.slane %v669_v54, 1  ;;  %v657_v62 = vshll.u32 %v3288_v55, 16  ;;  %v909_v4 = vrot.slane %v3288_v55, 1 }
  0x1f   : > { %v664_v63 = vrot.slane %v662_v56, 1  ;;  %v914_v1 = vsel %vm902_vm3, %v912_v57, %v913_v42  ;;  %v477_v9 = vrot.slane %v475_v34, 7  ;;  %v473_v11 = vor.u32 %v471_v33, %v470_v5 }
  0x20   : > { %v653_v6 = vsel %vm629_vm5, %v648_v59, %v652_v46  ;;  %v672_v7 = vor.u32 %v671_v60, %v667_v53  ;;  %v659_v8 = vrot.slane %v657_v62, 1  ;;  %v911_v10 = vsel %vm902_vm3, %v909_v4, %v910_v58 }
  0x21   : > { %836 = vrot.lane.b32.xlu0 %v653_v6, %s3172_s14  ;;  %v616_v12 = vsel %vm3229_vm2, %v470_v5, 0  ;;  %v478_v13 = vshll.u32 %v3147_v26, 16  ;;  %v617_v17 = vsel %vm3229_vm2, %v477_v9, 0  ;;  %v3308_v20 = vsel %vm3229_vm2, 0, %v473_v11 }
  0x22   : > { %v677_v14 = vsel %vm629_vm5, %v672_v7, %v676_v48  ;;  %v660_v15 = vor.u32 %v659_v8, %v655_v61  ;;  %v686_v16 = vshll.u32 %v616_v12, 16  ;;  %v698_v22 = vshll.u32 %v617_v17, 16 }
  0x23   : > { %840 = vrot.lane.b32.xlu1 %v677_v14, %s3172_s14  ;;  %v480_v21 = vor.u32 %v478_v13, %v477_v9  ;;  %v916_v23 = vrot.slane %v616_v12, 1  ;;  %v679_v26 = vshrl.u32 %v3308_v20, 16  ;;  %v681_v27 = vshll.u32 %v3308_v20, 16 }
  0x24   : > { %v665_v25 = vsel %vm629_vm5, %v660_v15, %v664_v63  ;;  %v688_v28 = vrot.slane %v686_v16, 1  ;;  %v700_v31 = vrot.slane %v698_v22, 1  ;;  %v915_v32 = vrot.slane %v3308_v20, 1 }
  0x25   : > { %838 = vrot.lane.b32.xlu0 %v665_v25, %s3172_s14  ;;  %v3320_v30 = vsel %vm3229_vm2, 0, %v480_v21  ;;  %v919_v33 = vrot.slane %v617_v17, 1  ;;  %v683_v34 = vrot.slane %v681_v27, 1  ;;  %v482_v40 = vshrl.u32 %v3148_v18, 16 }
  0x26   : > { %v691_v35 = vshrl.u32 %v3320_v30, 16  ;;  %v693_v36 = vshll.u32 %v3320_v30, 16  ;;  %v918_v37 = vrot.slane %v3320_v30, 1  ;;  %v917_v38 = vsel %vm902_vm3, %v915_v32, %v916_v23 }
  0x27   : > { %960 = vrot.lane.b32.xlu1 %v914_v1, %s3171_s13  ;;  %v485_v41 = vshll.u32 %v3148_v18, 16  ;;  %v489_v42 = vshrl.u32 %v3149_v19, 16  ;;  %v684_v43 = vor.u32 %v683_v34, %v679_v26  ;;  %v492_v46 = vshll.u32 %v3149_v19, 16  ;;  %v3152_v34 = vld [vmem:[%s3253_s12 + $0x48] sm:$0xff]  }
  0x28   : > { %v695_v44 = vrot.slane %v693_v36, 1  ;;  %v920_v45 = vsel %vm902_vm3, %v918_v37, %v919_v33  ;;  %v484_v48 = vrot.slane %v482_v40, 7  ;;  %v496_v50 = vshrl.u32 %v3150_v24, 16  ;;  %v3153_v40 = vld [vmem:[%s3253_s12 + $0x50] sm:$0xff]  }
  0x29   : > { %958 = vrot.lane.b32.xlu0 %v911_v10, %s3171_s13  ;;  %v491_v49 = vrot.slane %v489_v42, 7  ;;  %v499_v51 = vshll.u32 %v3150_v24, 16  ;;  %v689_v52 = vsel %vm629_vm5, %v684_v43, %v688_v28  ;;  %v503_v54 = vshrl.u32 %v3315_v29, 16 }
  0x2a   : > { %v696_v53 = vor.u32 %v695_v44, %v691_v35  ;;  %v506_v56 = vshll.u32 %v3315_v29, 16  ;;  %v487_v57 = vor.u32 %v485_v41, %v484_v48  ;;  %v618_v58 = vsel %vm3229_vm2, %v484_v48, 0 }
  0x2b   : > { %v494_v59 = vor.u32 %v492_v46, %v491_v49  ;;  %v619_v60 = vsel %vm3229_vm2, %v491_v49, 0  ;;  %v710_v62 = vshll.u32 %v618_v58, 16  ;;  %v922_v1 = vrot.slane %v618_v58, 1  ;;  %v3155_v58 = vld [vmem:[%s3253_s12 + $0x60] sm:$0xff]  }
  0x2c   : > { %v701_v61 = vsel %vm629_vm5, %v696_v53, %v700_v31  ;;  %v722_v63 = vshll.u32 %v619_v60, 16  ;;  %v3342_v4 = vsel %vm3229_vm2, 0, %v487_v57  ;;  %v925_v6 = vrot.slane %v619_v60, 1 }
  0x2d   : > { %842 = vrot.lane.b32.xlu0 %v689_v52, %s3172_s14  ;;  %844 = vrot.lane.b32.xlu1 %v701_v61, %s3172_s14  ;;  %v3346_v5 = vsel %vm3229_vm2, 0, %v494_v59  ;;  %v498_v7 = vrot.slane %v496_v50, 7  ;;  %v703_v8 = vshrl.u32 %v3342_v4, 16  ;;  %v705_v9 = vshll.u32 %v3342_v4, 16 }
  0x2e   : > { %v712_v10 = vrot.slane %v710_v62, 1  ;;  %v715_v11 = vshrl.u32 %v3346_v5, 16  ;;  %v717_v12 = vshll.u32 %v3346_v5, 16  ;;  %v724_v13 = vrot.slane %v722_v63, 1 }
  0x2f   : > { %v921_v14 = vrot.slane %v3342_v4, 1  ;;  %v924_v15 = vrot.slane %v3346_v5, 1  ;;  %v707_v16 = vrot.slane %v705_v9, 1  ;;  %v501_v17 = vor.u32 %v499_v51, %v498_v7 }
  0x30   : > { %v620_v18 = vsel %vm3229_vm2, %v498_v7, 0  ;;  %v505_v19 = vrot.slane %v503_v54, 7  ;;  %v719_v21 = vrot.slane %v717_v12, 1  ;;  %v510_v53 = vshrl.u32 %v3152_v34, 16 }
  0x31   : > { %962 = vrot.lane.b32.xlu0 %v917_v38, %s3171_s13  ;;  %964 = vrot.lane.b32.xlu1 %v920_v45, %s3171_s13  ;;  %v923_v22 = vsel %vm902_vm3, %v921_v14, %v922_v1  ;;  %v926_v23 = vsel %vm902_vm3, %v924_v15, %v925_v6  ;;  %v734_v24 = vshll.u32 %v620_v18, 16  ;;  %v708_v25 = vor.u32 %v707_v16, %v703_v8  ;;  %v3154_v45 = vld [vmem:[%s3253_s12 + $0x58] sm:$0xff]  }
  0x32   : > { %v3362_v26 = vsel %vm3229_vm2, 0, %v501_v17  ;;  %v508_v27 = vor.u32 %v506_v56, %v505_v19  ;;  %v621_v28 = vsel %vm3229_vm2, %v505_v19, 0  ;;  %v720_v29 = vor.u32 %v719_v21, %v715_v11 }
  0x33   : > { %v727_v31 = vshrl.u32 %v3362_v26, 16  ;;  %v729_v32 = vshll.u32 %v3362_v26, 16  ;;  %v736_v33 = vrot.slane %v734_v24, 1  ;;  %v713_v35 = vsel %vm629_vm5, %v708_v25, %v712_v10 }
  0x34   : > { %v3372_v36 = vsel %vm3229_vm2, 0, %v508_v27  ;;  %v746_v37 = vshll.u32 %v621_v28, 16  ;;  %v927_v38 = vrot.slane %v3362_v26, 1  ;;  %v725_v41 = vsel %vm629_vm5, %v720_v29, %v724_v13 }
  0x35   : > { %846 = vrot.lane.b32.xlu0 %v713_v35, %s3172_s14  ;;  %v731_v42 = vrot.slane %v729_v32, 1  ;;  %v739_v43 = vshrl.u32 %v3372_v36, 16  ;;  %v741_v44 = vshll.u32 %v3372_v36, 16  ;;  %848 = vrot.lane.b32.xlu1 %v725_v41, %s3172_s14  ;;  %v928_v48 = vrot.slane %v620_v18, 1 }
  0x36   : > { %v748_v46 = vrot.slane %v746_v37, 1  ;;  %v930_v49 = vrot.slane %v3372_v36, 1  ;;  %v931_v50 = vrot.slane %v621_v28, 1  ;;  %v513_v54 = vshll.u32 %v3152_v34, 16 }
  0x37   : > { %v732_v51 = vor.u32 %v731_v42, %v727_v31  ;;  %v743_v52 = vrot.slane %v741_v44, 1  ;;  %v517_v56 = vshrl.u32 %v3153_v40, 16  ;;  %v520_v57 = vshll.u32 %v3153_v40, 16 }
  0x38   : > { %v929_v60 = vsel %vm902_vm3, %v927_v38, %v928_v48  ;;  %v512_v61 = vrot.slane %v510_v53, 7  ;;  %v524_v62 = vshrl.u32 %v3154_v45, 16  ;;  %v932_v1 = vsel %vm902_vm3, %v930_v49, %v931_v50  ;;  %v3157_v53 = vld [vmem:[%s3253_s12 + $0x70] sm:$0xff]  }
  0x39   : > { %966 = vrot.lane.b32.xlu0 %v923_v22, %s3171_s13  ;;  %v744_v59 = vor.u32 %v743_v52, %v739_v43  ;;  %968 = vrot.lane.b32.xlu1 %v926_v23, %s3171_s13  ;;  %v737_v63 = vsel %vm629_vm5, %v732_v51, %v736_v33  ;;  %v519_v6 = vrot.slane %v517_v56, 7  ;;  %v527_v7 = vshll.u32 %v3154_v45, 16  ;;  %v3156_v45 = vld [vmem:[%s3253_s12 + $0x68] sm:$0xff]  }
  0x3a   : > { %v515_v9 = vor.u32 %v513_v54, %v512_v61  ;;  %v622_v10 = vsel %vm3229_vm2, %v512_v61, 0  ;;  %v526_v11 = vrot.slane %v524_v62, 7  ;;  %v531_v15 = vshrl.u32 %v3155_v58, 16 }
  0x3b   : > { %v749_v8 = vsel %vm629_vm5, %v744_v59, %v748_v46  ;;  %v758_v12 = vshll.u32 %v622_v10, 16  ;;  %v522_v13 = vor.u32 %v520_v57, %v519_v6  ;;  %v623_v14 = vsel %vm3229_vm2, %v519_v6, 0  ;;  %v3158_v59 = vld [vmem:[%s3253_s12 + $0x78] sm:$0xff]   ;;  %s325_s12 = scalar_lea.vmem %s4424_s8, %s3010_s29 }
  0x3c   : > { %v3397_v16 = vsel %vm3229_vm2, 0, %v515_v9  ;;  %v770_v17 = vshll.u32 %v623_v14, 16  ;;  %v529_v18 = vor.u32 %v527_v7, %v526_v11  ;;  %v534_v19 = vshll.u32 %v3155_v58, 16 }
  0x3d   : > { %850 = vrot.lane.b32.xlu0 %v737_v63, %s3172_s14  ;;  %852 = vrot.lane.b32.xlu1 %v749_v8, %s3172_s14  ;;  %v751_v21 = vshrl.u32 %v3397_v16, 16  ;;  %v753_v22 = vshll.u32 %v3397_v16, 16  ;;  %v3404_v23 = vsel %vm3229_vm2, 0, %v522_v13  ;;  %v934_v24 = vrot.slane %v622_v10, 1 }
  0x3e   : > { %v760_v25 = vrot.slane %v758_v12, 1  ;;  %v763_v27 = vshrl.u32 %v3404_v23, 16  ;;  %v765_v28 = vshll.u32 %v3404_v23, 16  ;;  %v937_v29 = vrot.slane %v623_v14, 1 }
  0x3f   : > { %v755_v31 = vrot.slane %v753_v22, 1  ;;  %v933_v32 = vrot.slane %v3397_v16, 1  ;;  %v3411_v33 = vsel %vm3229_vm2, 0, %v529_v18  ;;  %v624_v34 = vsel %vm3229_vm2, %v526_v11, 0 }
  0x40   : > { %v767_v35 = vrot.slane %v765_v28, 1  ;;  %v772_v37 = vrot.slane %v770_v17, 1  ;;  %v775_v38 = vshrl.u32 %v3411_v33, 16  ;;  %v777_v40 = vshll.u32 %v3411_v33, 16 }
  0x41   : > { %970 = vrot.lane.b32.xlu0 %v929_v60, %s3171_s13  ;;  %972 = vrot.lane.b32.xlu1 %v932_v1, %s3171_s13  ;;  %v756_v41 = vor.u32 %v755_v31, %v751_v21  ;;  %v936_v42 = vrot.slane %v3404_v23, 1  ;;  %v782_v43 = vshll.u32 %v624_v34, 16  ;;  %v533_v44 = vrot.slane %v531_v15, 7 }
  0x42   : > { %v768_v46 = vor.u32 %v767_v35, %v763_v27  ;;  %v779_v48 = vrot.slane %v777_v40, 1  ;;  %v935_v50 = vsel %vm902_vm3, %v933_v32, %v934_v24  ;;  %v538_v62 = vshrl.u32 %v3156_v45, 16 }
  0x43   : > { %v761_v49 = vsel %vm629_vm5, %v756_v41, %v760_v25  ;;  %v536_v51 = vor.u32 %v534_v19, %v533_v44  ;;  %v625_v52 = vsel %vm3229_vm2, %v533_v44, 0  ;;  %v784_v57 = vrot.slane %v782_v43, 1 }
  0x44   : > { %v773_v54 = vsel %vm629_vm5, %v768_v46, %v772_v37  ;;  %v780_v56 = vor.u32 %v779_v48, %v775_v38  ;;  %v794_v58 = vshll.u32 %v625_v52, 16  ;;  %v938_v60 = vsel %vm902_vm3, %v936_v42, %v937_v29 }
  0x45   : > { %854 = vrot.lane.b32.xlu0 %v761_v49, %s3172_s14  ;;  %856 = vrot.lane.b32.xlu1 %v773_v54, %s3172_s14  ;;  %v3433_v61 = vsel %vm3229_vm2, 0, %v536_v51  ;;  %v541_v63 = vshll.u32 %v3156_v45, 16  ;;  %v939_v7 = vrot.slane %v3411_v33, 1  ;;  %v940_v8 = vrot.slane %v624_v34, 1 }
  0x46   : > { %v787_v1 = vshrl.u32 %v3433_v61, 16  ;;  %v789_v6 = vshll.u32 %v3433_v61, 16  ;;  %v943_v9 = vrot.slane %v625_v52, 1  ;;  %v540_v10 = vrot.slane %v538_v62, 7 }
  0x47   : > { %v545_v11 = vshrl.u32 %v3157_v53, 16  ;;  %v548_v12 = vshll.u32 %v3157_v53, 16  ;;  %v785_v13 = vsel %vm629_vm5, %v780_v56, %v784_v57  ;;  %v796_v15 = vrot.slane %v794_v58, 1 }
  0x48   : > { %v791_v14 = vrot.slane %v789_v6, 1  ;;  %v552_v17 = vshrl.u32 %v3158_v59, 16  ;;  %v942_v18 = vrot.slane %v3433_v61, 1  ;;  %v543_v19 = vor.u32 %v541_v63, %v540_v10 }
  0x49   : > { %974 = vrot.lane.b32.xlu0 %v935_v50, %s3171_s13  ;;  %976 = vrot.lane.b32.xlu1 %v938_v60, %s3171_s13  ;;  %v626_v21 = vsel %vm3229_vm2, %v540_v10, 0  ;;  %v547_v22 = vrot.slane %v545_v11, 7  ;;  %v555_v27 = vshll.u32 %v3158_v59, 16  ;;  %v941_v38 = vsel %vm902_vm3, %v939_v7, %v940_v8 }
  0x4a   : > { %v792_v24 = vor.u32 %v791_v14, %v787_v1  ;;  %v806_v25 = vshll.u32 %v626_v21, 16  ;;  %v3446_v28 = vsel %vm3229_vm2, 0, %v543_v19  ;;  %v554_v32 = vrot.slane %v552_v17, 7 }
  0x4b   : > { %v550_v29 = vor.u32 %v548_v12, %v547_v22  ;;  %v627_v31 = vsel %vm3229_vm2, %v547_v22, 0  ;;  %v799_v35 = vshrl.u32 %v3446_v28, 16  ;;  %v801_v37 = vshll.u32 %v3446_v28, 16 }
  0x4c   : > { %v797_v34 = vsel %vm629_vm5, %v792_v24, %v796_v15  ;;  %v944_v40 = vsel %vm902_vm3, %v942_v18, %v943_v9  ;;  %v818_v42 = vshll.u32 %v627_v31, 16  ;;  %v808_v44 = vrot.slane %v806_v25, 1 }
  0x4d   : > { %858 = vrot.lane.b32.xlu0 %v785_v13, %s3172_s14  ;;  %860 = vrot.lane.b32.xlu1 %v797_v34, %s3172_s14  ;;  %v3459_v41 = vsel %vm3229_vm2, 0, %v550_v29  ;;  %v803_v43 = vrot.slane %v801_v37, 1  ;;  %v946_v48 = vrot.slane %v626_v21, 1  ;;  %v557_v49 = vor.u32 %v555_v27, %v554_v32 }
  0x4e   : > { %v811_v45 = vshrl.u32 %v3459_v41, 16  ;;  %v813_v46 = vshll.u32 %v3459_v41, 16  ;;  %v628_v50 = vsel %vm3229_vm2, %v554_v32, 0  ;;  %v820_v53 = vrot.slane %v818_v42, 1 }
  0x4f   : > { %v804_v51 = vor.u32 %v803_v43, %v799_v35  ;;  %v945_v54 = vrot.slane %v3446_v28, 1  ;;  %v948_v56 = vrot.slane %v3459_v41, 1  ;;  %v949_v57 = vrot.slane %v627_v31, 1 }
  0x50   : > { %v815_v52 = vrot.slane %v813_v46, 1  ;;  %v3471_v58 = vsel %vm3229_vm2, 0, %v557_v49  ;;  %v830_v59 = vshll.u32 %v628_v50, 16  ;;  %v952_v13 = vrot.slane %v628_v50, 1 }
  0x51   : > { %978 = vrot.lane.b32.xlu0 %v941_v38, %s3171_s13  ;;  %980 = vrot.lane.b32.xlu1 %v944_v40, %s3171_s13  ;;  %v809_v60 = vsel %vm629_vm5, %v804_v51, %v808_v44  ;;  %v823_v63 = vshrl.u32 %v3471_v58, 16  ;;  %v825_v1 = vshll.u32 %v3471_v58, 16  ;;  %v947_v8 = vsel %vm902_vm3, %v945_v54, %v946_v48 }
  0x52   : > { %v816_v62 = vor.u32 %v815_v52, %v811_v45  ;;  %v832_v9 = vrot.slane %v830_v59, 1  ;;  %v950_v10 = vsel %vm902_vm3, %v948_v56, %v949_v57  ;;  %v951_v12 = vrot.slane %v3471_v58, 1 }
  0x53   : > { %v827_v7 = vrot.slane %v825_v1, 1 }
  0x54   : > { %v821_v6 = vsel %vm629_vm5, %v816_v62, %v820_v53  ;;  %v953_v15 = vsel %vm902_vm3, %v951_v12, %v952_v13 }
  0x55   : > { %862 = vrot.lane.b32.xlu0 %v809_v60, %s3172_s14  ;;  %864 = vrot.lane.b32.xlu1 %v821_v6, %s3172_s14  ;;  %v828_v11 = vor.u32 %v827_v7, %v823_v63 }
  0x57   : > { %v833_v14 = vsel %vm629_vm5, %v828_v11, %v832_v9 }
  0x59   : > { %982 = vrot.lane.b32.xlu0 %v947_v8, %s3171_s13  ;;  %984 = vrot.lane.b32.xlu1 %v950_v10, %s3171_s13 }
  0x5d   : > { %866 = vrot.lane.b32.xlu0 %v833_v14, %s3172_s14  ;;  %986 = vrot.lane.b32.xlu1 %v953_v15, %s3171_s13 }
  0x86   : > { %v955_v18 = vpop.permute.xlu1 %954 }
  0x8a   : > { %v835_v17 = vpop.permute.xlu0 %834 }
  0x8b   : > { %v990_v19 = vsel %vm988_vm6, %v3236_v3, %v835_v17 }
  0x8c   : > { %v3491_v21 = vsel %vm1023_vm7, %v990_v19, %v955_v18 }
  0x8d   : > { %3052 = vmatprep.mubr.msk.bf16.mxu0 %vm1065_vm8, %v3491_v21  ;;  %3090 = vmatprep.mubr.msk.bf16.mxu1 %vm1065_vm8, %v3491_v21 }
  0x8f   : > { %v957_v22 = vpop.permute.xlu1 %956 }
  0x93   : > { %v837_v24 = vpop.permute.xlu0 %836 }
  0x94   : > { %v992_v25 = vsel %vm988_vm6, %v3271_v39, %v837_v24 }
  0x95   : > { %v841_v27 = vpop.permute.xlu1 %840  ;;  %v1027_v29 = vsel %vm1023_vm7, %v992_v25, %v957_v22 }
  0x96   : > { %3053 = vmatmul.mubr.msk.bf16.vlgmr.msra.gmra.mrb[0].mxu0 %vm1065_vm8, %v1027_v29  ;;  %v996_v31 = vsel %vm988_vm6, %v3278_v47, %v841_v27 }
  0x97   : > { %v839_v3 = vpop.permute.xlu0 %838 }
  0x98   : > { %v994_v34 = vsel %vm988_vm6, %v3288_v55, %v839_v3 }
  0x99   : > { %v961_v32 = vpop.permute.xlu1 %960 }
  0x9a   : > { %v1031_v38 = vsel %vm1023_vm7, %v996_v31, %v961_v32 }
  0x9b   : > { %v959_v35 = vpop.permute.xlu0 %958 }
  0x9c   : > { %v1029_v37 = vsel %vm1023_vm7, %v994_v34, %v959_v35 }
  0x9d   : > { %3056 = vmatprep.mubr.msk.bf16.mxu0 %vm1065_vm8, %v1029_v37 }
  0x9e   : > { %3057 = vmatmul.mubr.msk.bf16.gmra.mrb[4].mxu0 %vm1065_vm8, %v1031_v38 }
  0x9f   : > { %v843_v39 = vpop.permute.xlu0 %842  ;;  %v845_v40 = vpop.permute.xlu1 %844 }
  0xa0   : > { %v998_v42 = vsel %vm988_vm6, %v3308_v20, %v843_v39  ;;  %v1000_v47 = vsel %vm988_vm6, %v3320_v30, %v845_v40 }
  0xa3   : > { %v963_v43 = vpop.permute.xlu0 %962  ;;  %v965_v44 = vpop.permute.xlu1 %964 }
  0xa4   : > { %v1033_v55 = vsel %vm1023_vm7, %v998_v42, %v963_v43  ;;  %v1035_v45 = vsel %vm1023_vm7, %v1000_v47, %v965_v44 }
  0xa5   : > { %3060 = vmatprep.mubr.msk.bf16.mxu0 %vm1065_vm8, %v1033_v55 }
  0xa6   : > { %3061 = vmatmul.mubr.msk.bf16.gmra.mrb[8].mxu0 %vm1065_vm8, %v1035_v45 }
  0xa7   : > { %v847_v46 = vpop.permute.xlu0 %846  ;;  %v849_v48 = vpop.permute.xlu1 %848 }
  0xa8   : > { %v1002_v49 = vsel %vm988_vm6, %v3342_v4, %v847_v46  ;;  %v1004_v20 = vsel %vm988_vm6, %v3346_v5, %v849_v48 }
  0xab   : > { %v967_v50 = vpop.permute.xlu0 %966  ;;  %v969_v51 = vpop.permute.xlu1 %968 }
  0xac   : > { %v1037_v30 = vsel %vm1023_vm7, %v1002_v49, %v967_v50  ;;  %v1039_v52 = vsel %vm1023_vm7, %v1004_v20, %v969_v51 }
  0xad   : > { %3064 = vmatprep.mubr.msk.bf16.mxu0 %vm1065_vm8, %v1037_v30 }
  0xae   : > { %3065 = vmatmul.mubr.msk.bf16.gmra.mrb[12].mxu0 %vm1065_vm8, %v1039_v52 }
  0xaf   : > { %v851_v53 = vpop.permute.xlu0 %850  ;;  %v853_v54 = vpop.permute.xlu1 %852 }
  0xb0   : > { %v1006_v56 = vsel %vm988_vm6, %v3362_v26, %v851_v53  ;;  %v1008_v4 = vsel %vm988_vm6, %v3372_v36, %v853_v54 }
  0xb3   : > { %v971_v57 = vpop.permute.xlu0 %970  ;;  %v973_v59 = vpop.permute.xlu1 %972 }
  0xb4   : > { %v1041_v5 = vsel %vm1023_vm7, %v1006_v56, %v971_v57  ;;  %v1043_v60 = vsel %vm1023_vm7, %v1008_v4, %v973_v59 }
  0xb5   : > { %3068 = vmatprep.mubr.msk.bf16.mxu0 %vm1065_vm8, %v1041_v5 }
  0xb6   : > { %3069 = vmatmul.mubr.msk.bf16.gmra.mrb[16].mxu0 %vm1065_vm8, %v1043_v60 }
  0xb7   : > { %v855_v62 = vpop.permute.xlu0 %854  ;;  %v857_v63 = vpop.permute.xlu1 %856 }
  0xb8   : > { %v1010_v1 = vsel %vm988_vm6, %v3397_v16, %v855_v62  ;;  %v1012_v26 = vsel %vm988_vm6, %v3404_v23, %v857_v63 }
  0xbb   : > { %v975_v6 = vpop.permute.xlu0 %974  ;;  %v977_v7 = vpop.permute.xlu1 %976 }
  0xbc   : > { %v1045_v36 = vsel %vm1023_vm7, %v1010_v1, %v975_v6  ;;  %v1047_v8 = vsel %vm1023_vm7, %v1012_v26, %v977_v7 }
  0xbd   : > { %3072 = vmatprep.mubr.msk.bf16.mxu0 %vm1065_vm8, %v1045_v36 }
  0xbe   : > { %3073 = vmatmul.mubr.msk.bf16.gmra.mrb[20].mxu0 %vm1065_vm8, %v1047_v8 }
  0xbf   : > { %v859_v9 = vpop.permute.xlu0 %858  ;;  %v861_v10 = vpop.permute.xlu1 %860 }
  0xc0   : > { %v1014_v11 = vsel %vm988_vm6, %v3411_v33, %v859_v9  ;;  %v1016_v16 = vsel %vm988_vm6, %v3433_v61, %v861_v10 }
  0xc3   : > { %v979_v12 = vpop.permute.xlu0 %978  ;;  %v981_v13 = vpop.permute.xlu1 %980 }
  0xc4   : > { %v1049_v23 = vsel %vm1023_vm7, %v1014_v11, %v979_v12  ;;  %v1051_v14 = vsel %vm1023_vm7, %v1016_v16, %v981_v13  ;;  %v3753_v11 = vld [vmem:[%s4419_s3] ss:$0 sm:$0xff] }
  0xc5   : > { %3076 = vmatprep.mubr.msk.bf16.mxu0 %vm1065_vm8, %v1049_v23  ;;  %v3759_v13 = vld [vmem:[%s4420_s4] ss:$0 sm:$0xff] }
  0xc6   : > { %3077 = vmatmul.mubr.msk.bf16.gmra.mrb[24].mxu0 %vm1065_vm8, %v1051_v14 }
  0xc7   : > { %v863_v15 = vpop.permute.xlu0 %862  ;;  %v865_v17 = vpop.permute.xlu1 %864 }
  0xc8   : > { %v1018_v18 = vsel %vm988_vm6, %v3446_v28, %v863_v15  ;;  %v1020_v33 = vsel %vm988_vm6, %v3459_v41, %v865_v17 }
  0xcb   : > { %v983_v19 = vpop.permute.xlu0 %982  ;;  %v985_v22 = vpop.permute.xlu1 %984 }
  0xcc   : > { %v1053_v61 = vsel %vm1023_vm7, %v1018_v18, %v983_v19  ;;  %v1055_v24 = vsel %vm1023_vm7, %v1020_v33, %v985_v22 }
  0xcd   : > { %3080 = vmatprep.mubr.msk.bf16.mxu0 %vm1065_vm8, %v1053_v61 }
  0xce   : > { %3081 = vmatmul.mubr.msk.bf16.gmra.mrb[28].mxu0 %vm1065_vm8, %v1055_v24 }
  0xcf   : > { %v867_v25 = vpop.permute.xlu0 %866  ;;  %v987_v29 = vpop.permute.xlu1 %986 }
  0xd0   : > { %v1022_v27 = vsel %vm988_vm6, %v3471_v58, %v867_v25 }
  0xd1   : > { %v1057_v28 = vsel %vm1023_vm7, %v1022_v27, %v987_v29 }
  0xd2   : > { %3084 = vmatprep.mubr.msk.bf16.mxu0 %vm1065_vm8, %v1057_v28 }
  0xd6   : > { %3085 = vmatmul.mubr.msk.bf16.gmra.mrb[32].mxu0 %vm1065_vm8, %v3491_v21 }
 0x169   : > { %v3563_v41 = vpop.f32.mrb[0].mxu0 }
 0x16a   : > { %1313 = vrot.lane.b32.xlu0 %v3563_v41, %s3173_s15  ;;  %v3567_v3 = vpop.f32.mrb[1].mxu0 }
 0x16b   : > { %v3569_v31 = vpop.f32.mrb[2].mxu0 }
 0x16c   : > { %1315 = vrot.lane.b32.xlu1 %v3569_v31, %s3173_s15  ;;  %v3573_v58 = vpop.f32.mrb[3].mxu0 }
 0x171   : > { %v3575_v32 = vpop.f32.mrb[4].mxu0 }
 0x172   : > { %1321 = vrot.lane.b32.xlu0 %v3575_v32, %s3173_s15  ;;  %v3579_v34 = vpop.f32.mrb[5].mxu0 }
 0x173   : > { %v3581_v35 = vpop.f32.mrb[6].mxu0 }
 0x174   : > { %1323 = vrot.lane.b32.xlu1 %v3581_v35, %s3173_s15  ;;  %v3585_v37 = vpop.f32.mrb[7].mxu0 }
 0x176   : > { %1447 = vrot.lane.b32.xlu0 %v3575_v32, %s3174_s16 }
 0x178   : > { %1449 = vrot.lane.b32.xlu1 %v3581_v35, %s3174_s16 }
 0x179   : > { %v3591_v38 = vpop.f32.mrb[8].mxu0 }
 0x17a   : > { %1443 = vrot.lane.b32.xlu0 %v3579_v34, %s3174_s16  ;;  %v3595_v39 = vpop.f32.mrb[9].mxu0 }
 0x17b   : > { %v3597_v40 = vpop.f32.mrb[10].mxu0 }
 0x17c   : > { %1445 = vrot.lane.b32.xlu1 %v3585_v37, %s3174_s16  ;;  %v3601_v42 = vpop.f32.mrb[11].mxu0 }
 0x17e   : > { %1317 = vrot.lane.b32.xlu0 %v3579_v34, %s3173_s15 }
 0x180   : > { %1319 = vrot.lane.b32.xlu1 %v3585_v37, %s3173_s15 }
 0x181   : > { %v3607_v47 = vpop.f32.mrb[12].mxu0 }
 0x182   : > { %1329 = vrot.lane.b32.xlu0 %v3591_v38, %s3173_s15  ;;  %v3611_v43 = vpop.f32.mrb[13].mxu0 }
 0x183   : > { %v3613_v44 = vpop.f32.mrb[14].mxu0 }
 0x184   : > { %1331 = vrot.lane.b32.xlu1 %v3597_v40, %s3173_s15  ;;  %v3617_v55 = vpop.f32.mrb[15].mxu0 }
 0x186   : > { %1455 = vrot.lane.b32.xlu0 %v3591_v38, %s3174_s16 }
 0x188   : > { %1457 = vrot.lane.b32.xlu1 %v3597_v40, %s3174_s16 }
 0x189   : > { %v3623_v45 = vpop.f32.mrb[16].mxu0 }
 0x18a   : > { %1451 = vrot.lane.b32.xlu0 %v3595_v39, %s3174_s16  ;;  %v3627_v46 = vpop.f32.mrb[17].mxu0 }
 0x18b   : > { %v3629_v48 = vpop.f32.mrb[18].mxu0 }
 0x18c   : > { %1453 = vrot.lane.b32.xlu1 %v3601_v42, %s3174_s16  ;;  %v3633_v49 = vpop.f32.mrb[19].mxu0 }
 0x18e   : > { %1325 = vrot.lane.b32.xlu0 %v3595_v39, %s3173_s15 }
 0x190   : > { %1327 = vrot.lane.b32.xlu1 %v3601_v42, %s3173_s15 }
 0x191   : > { %v3639_v20 = vpop.f32.mrb[20].mxu0 }
 0x192   : > { %1337 = vrot.lane.b32.xlu0 %v3607_v47, %s3173_s15  ;;  %v3643_v50 = vpop.f32.mrb[21].mxu0 }
 0x193   : > { %v3645_v30 = vpop.f32.mrb[22].mxu0 }
 0x194   : > { %1339 = vrot.lane.b32.xlu1 %v3613_v44, %s3173_s15  ;;  %v3649_v51 = vpop.f32.mrb[23].mxu0 }
 0x196   : > { %1463 = vrot.lane.b32.xlu0 %v3607_v47, %s3174_s16 }
 0x198   : > { %1465 = vrot.lane.b32.xlu1 %v3613_v44, %s3174_s16 }
 0x199   : > { %v3655_v52 = vpop.f32.mrb[24].mxu0 }
 0x19a   : > { %1459 = vrot.lane.b32.xlu0 %v3611_v43, %s3174_s16  ;;  %v3659_v53 = vpop.f32.mrb[25].mxu0 }
 0x19b   : > { %v3661_v54 = vpop.f32.mrb[26].mxu0 }
 0x19c   : > { %1461 = vrot.lane.b32.xlu1 %v3617_v55, %s3174_s16  ;;  %v3665_v56 = vpop.f32.mrb[27].mxu0 }
 0x19e   : > { %1333 = vrot.lane.b32.xlu0 %v3611_v43, %s3173_s15 }
 0x1a0   : > { %1335 = vrot.lane.b32.xlu1 %v3617_v55, %s3173_s15 }
 0x1a1   : > { %v3671_v4 = vpop.f32.mrb[28].mxu0 }
 0x1a2   : > { %1345 = vrot.lane.b32.xlu0 %v3623_v45, %s3173_s15  ;;  %v3675_v57 = vpop.f32.mrb[29].mxu0 }
 0x1a3   : > { %v3677_v5 = vpop.f32.mrb[30].mxu0 }
 0x1a4   : > { %1347 = vrot.lane.b32.xlu1 %v3629_v48, %s3173_s15  ;;  %v3681_v59 = vpop.f32.mrb[31].mxu0 }
 0x1a6   : > { %1471 = vrot.lane.b32.xlu0 %v3623_v45, %s3174_s16 }
 0x1a8   : > { %1473 = vrot.lane.b32.xlu1 %v3629_v48, %s3174_s16 }
 0x1a9   : > { %v3086_v60 = vpop.f32.mrb[32].mxu0 }
 0x1aa   : > { %1467 = vrot.lane.b32.xlu0 %v3627_v46, %s3174_s16  ;;  %v1266_v62 = vpop.f32.mrb[33].mxu0 }
 0x1ab   : > { %v3087_v63 = vpop.f32.mrb[34].mxu0 }
 0x1ac   : > { %1469 = vrot.lane.b32.xlu1 %v3633_v49, %s3174_s16  ;;  %v1269_v1 = vpop.f32.mrb[35].mxu0 }
 0x1ae   : > { %1341 = vrot.lane.b32.xlu0 %v3627_v46, %s3173_s15 }
 0x1b0   : > { %1343 = vrot.lane.b32.xlu1 %v3633_v49, %s3173_s15 }
 0x1b2   : > { %1353 = vrot.lane.b32.xlu0 %v3639_v20, %s3173_s15 }
 0x1b4   : > { %1355 = vrot.lane.b32.xlu1 %v3645_v30, %s3173_s15 }
 0x1b6   : > { %1479 = vrot.lane.b32.xlu0 %v3639_v20, %s3174_s16 }
 0x1b8   : > { %1481 = vrot.lane.b32.xlu1 %v3645_v30, %s3174_s16 }
 0x1ba   : > { %1475 = vrot.lane.b32.xlu0 %v3643_v50, %s3174_s16 }
 0x1bc   : > { %1477 = vrot.lane.b32.xlu1 %v3649_v51, %s3174_s16 }
 0x1be   : > { %1349 = vrot.lane.b32.xlu0 %v3643_v50, %s3173_s15 }
 0x1c0   : > { %1351 = vrot.lane.b32.xlu1 %v3649_v51, %s3173_s15 }
 0x1c2   : > { %1361 = vrot.lane.b32.xlu0 %v3655_v52, %s3173_s15 }
 0x1c4   : > { %1363 = vrot.lane.b32.xlu1 %v3661_v54, %s3173_s15 }
 0x1c6   : > { %1487 = vrot.lane.b32.xlu0 %v3655_v52, %s3174_s16 }
 0x1c8   : > { %1489 = vrot.lane.b32.xlu1 %v3661_v54, %s3174_s16 }
 0x1ca   : > { %1483 = vrot.lane.b32.xlu0 %v3659_v53, %s3174_s16 }
 0x1cc   : > { %1485 = vrot.lane.b32.xlu1 %v3665_v56, %s3174_s16 }
 0x1ce   : > { %1357 = vrot.lane.b32.xlu0 %v3659_v53, %s3173_s15 }
 0x1d0   : > { %1359 = vrot.lane.b32.xlu1 %v3665_v56, %s3173_s15 }
 0x1d2   : > { %1369 = vrot.lane.b32.xlu0 %v3671_v4, %s3173_s15 }
 0x1d4   : > { %1371 = vrot.lane.b32.xlu1 %v3677_v5, %s3173_s15 }
 0x1d6   : > { %1495 = vrot.lane.b32.xlu0 %v3671_v4, %s3174_s16 }
 0x1d8   : > { %1497 = vrot.lane.b32.xlu1 %v3677_v5, %s3174_s16 }
 0x1da   : > { %1491 = vrot.lane.b32.xlu0 %v3675_v57, %s3174_s16 }
 0x1dc   : > { %1493 = vrot.lane.b32.xlu1 %v3681_v59, %s3174_s16  ;;  %v1314_v26 = vpop.permute.xlu0 %1313 }
 0x1dd   : > { %v1409_v10 = vadd.f32 %v1314_v26, %v3567_v3 }
 0x1de   : > { %1365 = vrot.lane.b32.xlu0 %v3675_v57, %s3173_s15  ;;  %v1316_v6 = vpop.permute.xlu1 %1315 }
 0x1df   : > { %v1410_v12 = vadd.f32 %v1316_v6, %v3573_v58 }
 0x1e0   : > { %1367 = vrot.lane.b32.xlu1 %v3681_v59, %s3173_s15 }
 0x1e2   : > { %1499 = vrot.lane.b32.xlu0 %v1266_v62, %s3174_s16 }
 0x1e4   : > { %1501 = vrot.lane.b32.xlu1 %v1269_v1, %s3174_s16  ;;  %v1322_v36 = vpop.permute.xlu0 %1321 }
 0x1e6   : > { %v1324_v7 = vpop.permute.xlu1 %1323  ;;  %1373 = vrot.lane.b32.xlu0 %v1266_v62, %s3173_s15 }
 0x1e8   : > { %1375 = vrot.lane.b32.xlu1 %v1269_v1, %s3173_s15  ;;  %v1448_v8 = vpop.permute.xlu0 %1447 }
 0x1ea   : > { %v1450_v9 = vpop.permute.xlu1 %1449  ;;  %1503 = vrot.lane.b32.xlu0 %v3086_v60, %s3174_s16 }
 0x1ec   : > { %1505 = vrot.lane.b32.xlu1 %v3087_v63, %s3174_s16  ;;  %v1444_v16 = vpop.permute.xlu0 %1443 }
 0x1ed   : > { %v1539_v23 = vadd.f32 %v1444_v16, %v1409_v10  ;;  %v1413_v10 = vadd.f32 %v1322_v36, %v3579_v34 }
 0x1ee   : > { %v1446_v14 = vpop.permute.xlu1 %1445 }
 0x1ef   : > { %v1578_v15 = vmul.f32 %v3753_v11, %v1539_v23  ;;  %v1540_v17 = vadd.f32 %v1446_v14, %v1410_v12 }
 0x1f0   : > { %v1318_v18 = vpop.permute.xlu0 %1317 }
 0x1f1   : > { %v1617_v33 = vadd.f32 %v3759_v13, %v1578_v15  ;;  %v1579_v19 = vmul.f32 %v3753_v11, %v1540_v17  ;;  %v1411_v61 = vadd.f32 %v3563_v41, %v1318_v18  ;;  %v1414_v17 = vadd.f32 %v1324_v7, %v3585_v37 }
 0x1f2   : > { %v1320_v22 = vpop.permute.xlu1 %1319 }
 0x1f3   : > { %v1618_v24 = vadd.f32 %v3759_v13, %v1579_v19  ;;  %v1541_v25 = vadd.f32 %v1448_v8, %v1411_v61  ;;  %v1412_v27 = vadd.f32 %v3569_v31, %v1320_v22  ;;  %v1649_v28 = vmax.f32 %v1617_v33, 0.0  ;;  %v3160_v31 = vld [vmem:[%s4421_s5] sm:$0x3f]  }
 0x1f4   : > { %v3767_v29 = vpop.permute.xlu0 %1329  ;;  %3127 = vmatprep.subr.msk.bf16.mxu1 %vm1100_vm4, %v3160_v31  ;;  %v2313_v15 = vsel %vm1100_vm4, %v3160_v31, 0 }
 0x1f5   : > { %v1650_v3 = vmax.f32 %v1618_v24, 0.0  ;;  %v1580_v58 = vmul.f32 %v3753_v11, %v1541_v25  ;;  %v1542_v60 = vadd.f32 %v1450_v9, %v1412_v27  ;;  %3089 = vmatpush3.bf16.msra.mxu1 %v2313_v15 }
 0x1f6   : > { %v3770_v62 = vpop.permute.xlu1 %1331 }
 0x1f7   : > { %v1681_v63 = vpack.c.bf16 %v1650_v3, %v1649_v28  ;;  %v1619_v1 = vadd.f32 %v3759_v13, %v1580_v58  ;;  %v1581_v41 = vmul.f32 %v3753_v11, %v1542_v60 }
 0x1f8   : > { %v1456_v26 = vpop.permute.xlu0 %1455 }
 0x1f9   : > { %v1698_v6 = vshrl.u32 %v1681_v63, 16  ;;  %v1620_v8 = vadd.f32 %v3759_v13, %v1581_v41  ;;  %v1701_v16 = vshll.u32 %v1681_v63, 16  ;;  %v1651_v23 = vmax.f32 %v1619_v1, 0.0 }
 0x1fa   : > { %v1458_v12 = vpop.permute.xlu1 %1457 }
 0x1fb   : > { %v1700_v9 = vrot.slane %v1698_v6, 7  ;;  %v1652_v14 = vmax.f32 %v1620_v8, 0.0 }
 0x1fc   : > { %v1452_v18 = vpop.permute.xlu0 %1451 }
 0x1fd   : > { %v1703_v33 = vor.u32 %v1701_v16, %v1700_v9  ;;  %v1682_v19 = vpack.c.bf16 %v1652_v14, %v1651_v23  ;;  %v1543_v61 = vadd.f32 %v1452_v18, %v1413_v10  ;;  %v1857_v22 = vsel %vm3229_vm2, %v1700_v9, 0 }
 0x1fe   : > { %v1454_v34 = vpop.permute.xlu1 %1453  ;;  %v2130_v37 = vrot.slane %v1857_v22, 1  ;;  %v1881_v3 = vshll.u32 %v1857_v22, 16 }
 0x1ff   : > { %v1582_v36 = vmul.f32 %v3753_v11, %v1543_v61  ;;  %v1544_v24 = vadd.f32 %v1454_v34, %v1414_v17  ;;  %v3787_v25 = vsel %vm3229_vm2, 0, %v1703_v33  ;;  %v1705_v1 = vshrl.u32 %v1682_v19, 16 }
 0x200   : > { %v1326_v27 = vpop.permute.xlu0 %1325  ;;  %v2129_v28 = vrot.slane %v3787_v25, 1  ;;  %v1876_v7 = vshll.u32 %v3787_v25, 16  ;;  %v1874_v8 = vshrl.u32 %v3787_v25, 16  ;;  %v1708_v23 = vshll.u32 %v1682_v19, 16 }
 0x201   : > { %v1621_v58 = vadd.f32 %v3759_v13, %v1582_v36  ;;  %v1583_v60 = vmul.f32 %v3753_v11, %v1544_v24  ;;  %v1415_v63 = vadd.f32 %v3575_v32, %v1326_v27  ;;  %v1883_v17 = vrot.slane %v1881_v3, 1 }
 0x202   : > { %v1328_v41 = vpop.permute.xlu1 %1327  ;;  %v2131_v6 = vsel %vm902_vm3, %v2129_v28, %v2130_v37  ;;  %v1878_v31 = vrot.slane %v1876_v7, 1  ;;  %v1707_v32 = vrot.slane %v1705_v1, 7  ;;  %v1417_v3 = vadd.f32 %v3767_v29, %v3595_v39 }
 0x203   : > { %v1622_v10 = vadd.f32 %v3759_v13, %v1583_v60  ;;  %v1545_v16 = vadd.f32 %v1456_v26, %v1415_v63  ;;  %v1416_v9 = vadd.f32 %v3581_v35, %v1328_v41  ;;  %2177 = vrot.lane.b32.xlu1 %v2131_v6, %s3171_s13  ;;  %v1653_v18 = vmax.f32 %v1621_v58, 0.0 }
 0x204   : > { %v3799_v14 = vpop.permute.xlu0 %1337  ;;  %v1879_v15 = vor.u32 %v1878_v31, %v1874_v8  ;;  %v1710_v26 = vor.u32 %v1708_v23, %v1707_v32  ;;  %v1858_v27 = vsel %vm3229_vm2, %v1707_v32, 0  ;;  %v1418_v31 = vadd.f32 %v3770_v62, %v3601_v42 }
 0x205   : > { %v1654_v33 = vmax.f32 %v1622_v10, 0.0  ;;  %v1584_v61 = vmul.f32 %v3753_v11, %v1545_v16  ;;  %v1546_v22 = vadd.f32 %v1458_v12, %v1416_v9  ;;  %v1893_v63 = vshll.u32 %v1858_v27, 16 }
 0x206   : > { %v3802_v34 = vpop.permute.xlu1 %1339  ;;  %v1884_v36 = vsel %vm629_vm5, %v1879_v15, %v1883_v17  ;;  %v3812_v37 = vsel %vm3229_vm2, 0, %v1710_v26 }
 0x207   : > { %v1683_v24 = vpack.c.bf16 %v1654_v33, %v1653_v18  ;;  %v1623_v35 = vadd.f32 %v3759_v13, %v1584_v61  ;;  %v1585_v19 = vmul.f32 %v3753_v11, %v1546_v22  ;;  %2065 = vrot.lane.b32.xlu0 %v1884_v36, %s3172_s14  ;;  %v1888_v60 = vshll.u32 %v3812_v37, 16 }
 0x208   : > { %v1464_v28 = vpop.permute.xlu0 %1463  ;;  %v1886_v16 = vshrl.u32 %v3812_v37, 16  ;;  %v1895_v32 = vrot.slane %v1893_v63, 1  ;;  %v2132_v22 = vrot.slane %v3812_v37, 1 }
 0x209   : > { %v1712_v12 = vshrl.u32 %v1683_v24, 16  ;;  %v1624_v7 = vadd.f32 %v3759_v13, %v1585_v19  ;;  %v1715_v41 = vshll.u32 %v1683_v24, 16  ;;  %v1655_v6 = vmax.f32 %v1623_v35, 0.0 }
 0x20a   : > { %v1466_v58 = vpop.permute.xlu1 %1465  ;;  %v1890_v9 = vrot.slane %v1888_v60, 1 }
 0x20b   : > { %v1714_v1 = vrot.slane %v1712_v12, 7  ;;  %v1656_v8 = vmax.f32 %v1624_v7, 0.0  ;;  %v2133_v7 = vrot.slane %v1858_v27, 1 }
 0x20c   : > { %v1460_v10 = vpop.permute.xlu0 %1459  ;;  %v1891_v29 = vor.u32 %v1890_v9, %v1886_v16 }
 0x20d   : > { %v1717_v23 = vor.u32 %v1715_v41, %v1714_v1  ;;  %v1684_v15 = vpack.c.bf16 %v1656_v8, %v1655_v6  ;;  %v1547_v17 = vadd.f32 %v1460_v10, %v1417_v3  ;;  %v1859_v39 = vsel %vm3229_vm2, %v1714_v1, 0 }
 0x20e   : > { %v1462_v18 = vpop.permute.xlu1 %1461  ;;  %v1896_v62 = vsel %vm629_vm5, %v1891_v29, %v1895_v32  ;;  %v1905_v24 = vshll.u32 %v1859_v39, 16  ;;  %v2134_v8 = vsel %vm902_vm3, %v2132_v22, %v2133_v7 }
 0x20f   : > { %v1586_v33 = vmul.f32 %v3753_v11, %v1547_v17  ;;  %v1548_v61 = vadd.f32 %v1462_v18, %v1418_v31  ;;  %v3827_v42 = vsel %vm3229_vm2, 0, %v1717_v23  ;;  %2067 = vrot.lane.b32.xlu0 %v1896_v62, %s3172_s14  ;;  %v1719_v1 = vshrl.u32 %v1684_v15, 16 }
 0x210   : > { %v1334_v36 = vpop.permute.xlu0 %1333  ;;  %v1900_v26 = vshll.u32 %v3827_v42, 16  ;;  %v1898_v60 = vshrl.u32 %v3827_v42, 16  ;;  %v1722_v10 = vshll.u32 %v1684_v15, 16  ;;  %v1907_v23 = vrot.slane %v1905_v24, 1 }
 0x211   : > { %v1625_v35 = vadd.f32 %v3759_v13, %v1586_v33  ;;  %v1587_v19 = vmul.f32 %v3753_v11, %v1548_v61  ;;  %v1419_v12 = vadd.f32 %v3591_v38, %v1334_v36  ;;  %v1721_v17 = vrot.slane %v1719_v1, 7 }
 0x212   : > { %v1336_v3 = vpop.permute.xlu1 %1335  ;;  %v1902_v63 = vrot.slane %v1900_v26, 1  ;;  %v2135_v33 = vrot.slane %v3827_v42, 1  ;;  %v2136_v26 = vrot.slane %v1859_v39, 1 }
 0x213   : > { %v1626_v41 = vadd.f32 %v3759_v13, %v1587_v19  ;;  %v1549_v6 = vadd.f32 %v1464_v28, %v1419_v12  ;;  %v1420_v31 = vadd.f32 %v3597_v40, %v1336_v3  ;;  %v1657_v38 = vmax.f32 %v1625_v35, 0.0  ;;  %2179 = vrot.lane.b32.xlu0 %v2134_v8, %s3171_s13 }
 0x214   : > { %v3839_v16 = vpop.permute.xlu0 %1345  ;;  %v1903_v9 = vor.u32 %v1902_v63, %v1898_v60  ;;  %v1724_v40 = vor.u32 %v1722_v10, %v1721_v17  ;;  %v1860_v62 = vsel %vm3229_vm2, %v1721_v17, 0  ;;  %v1421_v19 = vadd.f32 %v3799_v14, %v3611_v43 }
 0x215   : > { %v1658_v27 = vmax.f32 %v1626_v41, 0.0  ;;  %v1588_v29 = vmul.f32 %v3753_v11, %v1549_v6  ;;  %v1550_v32 = vadd.f32 %v1466_v58, %v1420_v31  ;;  %v2137_v7 = vsel %vm902_vm3, %v2135_v33, %v2136_v26 }
 0x216   : > { %v3843_v18 = vpop.permute.xlu1 %1347  ;;  %v1908_v28 = vsel %vm629_vm5, %v1903_v9, %v1907_v23  ;;  %v3854_v58 = vsel %vm3229_vm2, 0, %v1724_v40  ;;  %v1917_v60 = vshll.u32 %v1860_v62, 16  ;;  %v1422_v6 = vadd.f32 %v3802_v34, %v3617_v55 }
 0x217   : > { %v1685_v15 = vpack.c.bf16 %v1658_v27, %v1657_v38  ;;  %v1627_v61 = vadd.f32 %v3759_v13, %v1588_v29  ;;  %v1589_v22 = vmul.f32 %v3753_v11, %v1550_v32  ;;  %2069 = vrot.lane.b32.xlu1 %v1908_v28, %s3172_s14  ;;  %v1912_v3 = vshll.u32 %v3854_v58, 16 }
 0x218   : > { %v1472_v36 = vpop.permute.xlu0 %1471  ;;  %v1910_v31 = vshrl.u32 %v3854_v58, 16  ;;  %v1919_v38 = vrot.slane %v1917_v60, 1  ;;  %v2138_v28 = vrot.slane %v3854_v58, 1 }
 0x219   : > { %v1726_v24 = vshrl.u32 %v1685_v15, 16  ;;  %v1628_v35 = vadd.f32 %v3759_v13, %v1589_v22  ;;  %v1729_v1 = vshll.u32 %v1685_v15, 16  ;;  %v1659_v41 = vmax.f32 %v1627_v61, 0.0 }
 0x21a   : > { %v1474_v12 = vpop.permute.xlu1 %1473  ;;  %v1914_v10 = vrot.slane %v1912_v3, 1 }
 0x21b   : > { %v1728_v63 = vrot.slane %v1726_v24, 7  ;;  %v1660_v39 = vmax.f32 %v1628_v35, 0.0  ;;  %2181 = vrot.lane.b32.xlu1 %v2137_v7, %s3171_s13  ;;  %v2139_v24 = vrot.slane %v1860_v62, 1 }
 0x21c   : > { %v1468_v8 = vpop.permute.xlu0 %1467  ;;  %v1915_v17 = vor.u32 %v1914_v10, %v1910_v31 }
 0x21d   : > { %v1731_v43 = vor.u32 %v1729_v1, %v1728_v63  ;;  %v1686_v14 = vpack.c.bf16 %v1660_v39, %v1659_v41  ;;  %v1551_v9 = vadd.f32 %v1468_v8, %v1421_v19  ;;  %v1861_v23 = vsel %vm3229_vm2, %v1728_v63, 0 }
 0x21e   : > { %v1470_v27 = vpop.permute.xlu1 %1469  ;;  %v1920_v34 = vsel %vm629_vm5, %v1915_v17, %v1919_v38  ;;  %v1929_v15 = vshll.u32 %v1861_v23, 16  ;;  %v2140_v1 = vsel %vm902_vm3, %v2138_v28, %v2139_v24 }
 0x21f   : > { %v1590_v29 = vmul.f32 %v3753_v11, %v1551_v9  ;;  %v1552_v32 = vadd.f32 %v1470_v27, %v1422_v6  ;;  %v3871_v55 = vsel %vm3229_vm2, 0, %v1731_v43  ;;  %2071 = vrot.lane.b32.xlu0 %v1920_v34, %s3172_s14  ;;  %v1733_v3 = vshrl.u32 %v1686_v14, 16 }
 0x220   : > { %v1342_v33 = vpop.permute.xlu0 %1341  ;;  %v1924_v40 = vshll.u32 %v3871_v55, 16  ;;  %v1922_v19 = vshrl.u32 %v3871_v55, 16  ;;  %v1736_v39 = vshll.u32 %v1686_v14, 16  ;;  %v1931_v31 = vrot.slane %v1929_v15, 1 }
 0x221   : > { %v1629_v61 = vadd.f32 %v3759_v13, %v1590_v29  ;;  %v1591_v22 = vmul.f32 %v3753_v11, %v1552_v32  ;;  %v1423_v26 = vadd.f32 %v3607_v47, %v1342_v33  ;;  %v1735_v10 = vrot.slane %v1733_v3, 7 }
 0x222   : > { %v1344_v35 = vpop.permute.xlu1 %1343  ;;  %v1926_v7 = vrot.slane %v1924_v40, 1  ;;  %v2141_v38 = vrot.slane %v3871_v55, 1  ;;  %v2142_v34 = vrot.slane %v1861_v23, 1  ;;  %v1425_v15 = vadd.f32 %v3839_v16, %v3627_v46 }
 0x223   : > { %v1630_v60 = vadd.f32 %v3759_v13, %v1591_v22  ;;  %v1553_v63 = vadd.f32 %v1472_v36, %v1423_v26  ;;  %v1424_v41 = vadd.f32 %v3613_v44, %v1344_v35  ;;  %v1661_v47 = vmax.f32 %v1629_v61, 0.0  ;;  %2183 = vrot.lane.b32.xlu0 %v2140_v1, %s3171_s13 }
 0x224   : > { %v3883_v6 = vpop.permute.xlu0 %1353  ;;  %v1927_v8 = vor.u32 %v1926_v7, %v1922_v19  ;;  %v1738_v44 = vor.u32 %v1736_v39, %v1735_v10  ;;  %v1862_v32 = vsel %vm3229_vm2, %v1735_v10, 0  ;;  %v2143_v22 = vsel %vm902_vm3, %v2141_v38, %v2142_v34 }
 0x225   : > { %v1662_v62 = vmax.f32 %v1630_v60, 0.0  ;;  %v1592_v43 = vmul.f32 %v3753_v11, %v1553_v63  ;;  %v1554_v9 = vadd.f32 %v1474_v12, %v1424_v41  ;;  %v1941_v24 = vshll.u32 %v1862_v32, 16 }
 0x226   : > { %v3887_v17 = vpop.permute.xlu1 %1355  ;;  %v1932_v36 = vsel %vm629_vm5, %v1927_v8, %v1931_v31  ;;  %v3898_v12 = vsel %vm3229_vm2, 0, %v1738_v44  ;;  %v1426_v3 = vadd.f32 %v3843_v18, %v3633_v49 }
 0x227   : > { %v1687_v14 = vpack.c.bf16 %v1662_v62, %v1661_v47  ;;  %v1631_v27 = vadd.f32 %v3759_v13, %v1592_v43  ;;  %v1593_v29 = vmul.f32 %v3753_v11, %v1554_v9  ;;  %2073 = vrot.lane.b32.xlu1 %v1932_v36, %s3172_s14  ;;  %v1936_v26 = vshll.u32 %v3898_v12, 16 }
 0x228   : > { %v1480_v28 = vpop.permute.xlu0 %1479  ;;  %v1934_v63 = vshrl.u32 %v3898_v12, 16  ;;  %v1943_v31 = vrot.slane %v1941_v24, 1  ;;  %v2144_v43 = vrot.slane %v3898_v12, 1 }
 0x229   : > { %v1740_v33 = vshrl.u32 %v1687_v14, 16  ;;  %v1632_v40 = vadd.f32 %v3759_v13, %v1593_v29  ;;  %v1743_v19 = vshll.u32 %v1687_v14, 16  ;;  %v1663_v7 = vmax.f32 %v1631_v27, 0.0 }
 0x22a   : > { %v1482_v61 = vpop.permute.xlu1 %1481  ;;  %v1938_v1 = vrot.slane %v1936_v26, 1  ;;  %v2145_v29 = vrot.slane %v1862_v32, 1 }
 0x22b   : > { %v1742_v35 = vrot.slane %v1740_v33, 7  ;;  %v1664_v23 = vmax.f32 %v1632_v40, 0.0  ;;  %2185 = vrot.lane.b32.xlu1 %v2143_v22, %s3171_s13 }
 0x22c   : > { %v1476_v60 = vpop.permute.xlu0 %1475  ;;  %v1939_v8 = vor.u32 %v1938_v1, %v1934_v63  ;;  %v2146_v24 = vsel %vm902_vm3, %v2144_v43, %v2145_v29 }
 0x22d   : > { %v1745_v46 = vor.u32 %v1743_v19, %v1742_v35  ;;  %v1688_v16 = vpack.c.bf16 %v1664_v23, %v1663_v7  ;;  %v1555_v41 = vadd.f32 %v1476_v60, %v1425_v15  ;;  %v1863_v39 = vsel %vm3229_vm2, %v1742_v35, 0 }
 0x22e   : > { %v1478_v10 = vpop.permute.xlu1 %1477  ;;  %v1944_v18 = vsel %vm629_vm5, %v1939_v8, %v1943_v31  ;;  %v1953_v38 = vshll.u32 %v1863_v39, 16 }
 0x22f   : > { %v1594_v47 = vmul.f32 %v3753_v11, %v1555_v41  ;;  %v1556_v62 = vadd.f32 %v1478_v10, %v1426_v3  ;;  %v3915_v49 = vsel %vm3229_vm2, 0, %v1745_v46  ;;  %2075 = vrot.lane.b32.xlu0 %v1944_v18, %s3172_s14  ;;  %v1747_v15 = vshrl.u32 %v1688_v16, 16 }
 0x230   : > { %v1350_v9 = vpop.permute.xlu0 %1349  ;;  %v1948_v36 = vshll.u32 %v3915_v49, 16  ;;  %v1946_v33 = vshrl.u32 %v3915_v49, 16  ;;  %v1750_v19 = vshll.u32 %v1688_v16, 16  ;;  %v1955_v3 = vrot.slane %v1953_v38, 1 }
 0x231   : > { %v1633_v44 = vadd.f32 %v3759_v13, %v1594_v47  ;;  %v1595_v14 = vmul.f32 %v3753_v11, %v1556_v62  ;;  %v1427_v27 = vadd.f32 %v3623_v45, %v1350_v9  ;;  %v1749_v60 = vrot.slane %v1747_v15, 7 }
 0x232   : > { %v1352_v34 = vpop.permute.xlu1 %1351  ;;  %v1950_v40 = vrot.slane %v1948_v36, 1  ;;  %v2147_v41 = vrot.slane %v3915_v49, 1  ;;  %v2148_v62 = vrot.slane %v1863_v39, 1  ;;  %v1429_v9 = vadd.f32 %v3883_v6, %v3643_v50 }
 0x233   : > { %v1634_v22 = vadd.f32 %v3759_v13, %v1595_v14  ;;  %v1557_v26 = vadd.f32 %v1480_v28, %v1427_v27  ;;  %v1428_v35 = vadd.f32 %v3629_v48, %v1352_v34  ;;  %v1665_v45 = vmax.f32 %v1633_v44, 0.0  ;;  %2187 = vrot.lane.b32.xlu0 %v2146_v24, %s3171_s13 }
 0x234   : > { %v3927_v7 = vpop.permute.xlu0 %1361  ;;  %v1951_v23 = vor.u32 %v1950_v40, %v1946_v33  ;;  %v1752_v48 = vor.u32 %v1750_v19, %v1749_v60  ;;  %v1864_v10 = vsel %vm3229_vm2, %v1749_v60, 0  ;;  %v2149_v38 = vsel %vm902_vm3, %v2147_v41, %v2148_v62 }
 0x235   : > { %v1666_v32 = vmax.f32 %v1634_v22, 0.0  ;;  %v1596_v63 = vmul.f32 %v3753_v11, %v1557_v26  ;;  %v1558_v1 = vadd.f32 %v1482_v61, %v1428_v35  ;;  %v1965_v14 = vshll.u32 %v1864_v10, 16 }
 0x236   : > { %v3931_v46 = vpop.permute.xlu1 %1363  ;;  %v1956_v28 = vsel %vm629_vm5, %v1951_v23, %v1955_v3  ;;  %v3942_v61 = vsel %vm3229_vm2, 0, %v1752_v48  ;;  %v1430_v33 = vadd.f32 %v3887_v17, %v3649_v51 }
 0x237   : > { %v1689_v16 = vpack.c.bf16 %v1666_v32, %v1665_v45  ;;  %v1635_v8 = vadd.f32 %v3759_v13, %v1596_v63  ;;  %v1597_v31 = vmul.f32 %v3753_v11, %v1558_v1  ;;  %2077 = vrot.lane.b32.xlu1 %v1956_v28, %s3172_s14  ;;  %v1960_v44 = vshll.u32 %v3942_v61, 16 }
 0x238   : > { %v1488_v47 = vpop.permute.xlu0 %1487  ;;  %v1958_v15 = vshrl.u32 %v3942_v61, 16  ;;  %v1967_v19 = vrot.slane %v1965_v14, 1  ;;  %v2150_v45 = vrot.slane %v3942_v61, 1 }
 0x239   : > { %v1754_v43 = vshrl.u32 %v1689_v16, 16  ;;  %v1636_v18 = vadd.f32 %v3759_v13, %v1597_v31  ;;  %v1757_v29 = vshll.u32 %v1689_v16, 16  ;;  %v1667_v34 = vmax.f32 %v1635_v8, 0.0 }
 0x23a   : > { %v1490_v36 = vpop.permute.xlu1 %1489  ;;  %v1962_v22 = vrot.slane %v1960_v44, 1  ;;  %v2151_v16 = vrot.slane %v1864_v10, 1 }
 0x23b   : > { %v1756_v27 = vrot.slane %v1754_v43, 7  ;;  %v1668_v39 = vmax.f32 %v1636_v18, 0.0  ;;  %2189 = vrot.lane.b32.xlu1 %v2149_v38, %s3171_s13 }
 0x23c   : > { %v1484_v40 = vpop.permute.xlu0 %1483  ;;  %v1963_v35 = vor.u32 %v1962_v22, %v1958_v15  ;;  %v2152_v38 = vsel %vm902_vm3, %v2150_v45, %v2151_v16  ;;  %v1433_v45 = vadd.f32 %v3927_v7, %v3659_v53  ;;  %v1434_v16 = vadd.f32 %v3931_v46, %v3665_v56 }
 0x23d   : > { %v1759_v50 = vor.u32 %v1757_v29, %v1756_v27  ;;  %v1690_v6 = vpack.c.bf16 %v1668_v39, %v1667_v34  ;;  %v1559_v26 = vadd.f32 %v1484_v40, %v1429_v9  ;;  %v1865_v24 = vsel %vm3229_vm2, %v1756_v27, 0 }
 0x23e   : > { %v1486_v23 = vpop.permute.xlu1 %1485  ;;  %v1968_v17 = vsel %vm629_vm5, %v1963_v35, %v1967_v19  ;;  %v1977_v1 = vshll.u32 %v1865_v24, 16 }
 0x23f   : > { %v1598_v3 = vmul.f32 %v3753_v11, %v1559_v26  ;;  %v1560_v60 = vadd.f32 %v1486_v23, %v1430_v33  ;;  %v3959_v51 = vsel %vm3229_vm2, 0, %v1759_v50  ;;  %2079 = vrot.lane.b32.xlu0 %v1968_v17, %s3172_s14  ;;  %v1761_v43 = vshrl.u32 %v1690_v6, 16 }
 0x240   : > { %v1358_v32 = vpop.permute.xlu0 %1357  ;;  %v1972_v63 = vshll.u32 %v3959_v51, 16  ;;  %v1970_v31 = vshrl.u32 %v3959_v51, 16  ;;  %v1764_v14 = vshll.u32 %v1690_v6, 16  ;;  %v1979_v34 = vrot.slane %v1977_v1, 1 }
 0x241   : > { %v1637_v28 = vadd.f32 %v3759_v13, %v1598_v3  ;;  %v1599_v41 = vmul.f32 %v3753_v11, %v1560_v60  ;;  %v1431_v48 = vadd.f32 %v3639_v20, %v1358_v32  ;;  %v1763_v39 = vrot.slane %v1761_v43, 7 }
 0x242   : > { %v1360_v8 = vpop.permute.xlu1 %1359  ;;  %v1974_v62 = vrot.slane %v1972_v63, 1  ;;  %v2154_v23 = vrot.slane %v1865_v24, 1 }
 0x243   : > { %v1638_v18 = vadd.f32 %v3759_v13, %v1599_v41  ;;  %v1561_v9 = vadd.f32 %v1488_v47, %v1431_v48  ;;  %v1432_v44 = vadd.f32 %v3645_v30, %v1360_v8  ;;  %v1669_v33 = vmax.f32 %v1637_v28, 0.0  ;;  %2191 = vrot.lane.b32.xlu0 %v2152_v38, %s3171_s13 }
 0x244   : > { %v1370_v27 = vpop.permute.xlu0 %1369  ;;  %v1975_v29 = vor.u32 %v1974_v62, %v1970_v31  ;;  %v2153_v47 = vrot.slane %v3959_v51, 1  ;;  %v1766_v50 = vor.u32 %v1764_v14, %v1763_v39  ;;  %v1866_v35 = vsel %vm3229_vm2, %v1763_v39, 0 }
 0x245   : > { %v1670_v20 = vmax.f32 %v1638_v18, 0.0  ;;  %v1600_v10 = vmul.f32 %v3753_v11, %v1561_v9  ;;  %v1562_v40 = vadd.f32 %v1490_v36, %v1432_v44  ;;  %v1989_v1 = vshll.u32 %v1866_v35, 16 }
 0x246   : > { %v1372_v15 = vpop.permute.xlu1 %1371  ;;  %v1980_v22 = vsel %vm629_vm5, %v1975_v29, %v1979_v34  ;;  %v3982_v36 = vsel %vm3229_vm2, 0, %v1766_v50  ;;  %v2155_v32 = vsel %vm902_vm3, %v2153_v47, %v2154_v23  ;;  %v2157_v29 = vrot.slane %v1866_v35, 1 }
 0x247   : > { %v1691_v26 = vpack.c.bf16 %v1670_v20, %v1669_v33  ;;  %v1639_v30 = vadd.f32 %v3759_v13, %v1600_v10  ;;  %v1601_v6 = vmul.f32 %v3753_v11, %v1562_v40  ;;  %2081 = vrot.lane.b32.xlu1 %v1980_v22, %s3172_s14  ;;  %v1984_v63 = vshll.u32 %v3982_v36, 16 }
 0x248   : > { %v1496_v19 = vpop.permute.xlu0 %1495  ;;  %v1982_v31 = vshrl.u32 %v3982_v36, 16  ;;  %v2156_v53 = vrot.slane %v3982_v36, 1  ;;  %v1991_v44 = vrot.slane %v1989_v1, 1  ;;  %v1437_v33 = vadd.f32 %v1370_v27, %v3675_v57 }
 0x249   : > { %v1768_v3 = vshrl.u32 %v1691_v26, 16  ;;  %v1640_v60 = vadd.f32 %v3759_v13, %v1601_v6  ;;  %v1771_v41 = vshll.u32 %v1691_v26, 16  ;;  %v1671_v48 = vmax.f32 %v1639_v30, 0.0 }
 0x24a   : > { %v1498_v17 = vpop.permute.xlu1 %1497  ;;  %v1986_v62 = vrot.slane %v1984_v63, 1  ;;  %v1438_v20 = vadd.f32 %v1372_v15, %v3681_v59  ;;  %v2158_v30 = vsel %vm902_vm3, %v2156_v53, %v2157_v29 }
 0x24b   : > { %v1770_v28 = vrot.slane %v1768_v3, 7  ;;  %v1672_v24 = vmax.f32 %v1640_v60, 0.0  ;;  %2193 = vrot.lane.b32.xlu1 %v2155_v32, %s3171_s13 }
 0x24c   : > { %v1492_v8 = vpop.permute.xlu0 %1491  ;;  %v1987_v38 = vor.u32 %v1986_v62, %v1982_v31 }
 0x24d   : > { %v1773_v7 = vor.u32 %v1771_v41, %v1770_v28  ;;  %v1692_v43 = vpack.c.bf16 %v1672_v24, %v1671_v48  ;;  %v1563_v18 = vadd.f32 %v1492_v8, %v1433_v45  ;;  %v1867_v9 = vsel %vm3229_vm2, %v1770_v28, 0 }
 0x24e   : > { %v1494_v14 = vpop.permute.xlu1 %1493  ;;  %v2001_v46 = vshll.u32 %v1867_v9, 16  ;;  %v1992_v10 = vsel %vm629_vm5, %v1987_v38, %v1991_v44 }
 0x24f   : > { %v1602_v34 = vmul.f32 %v3753_v11, %v1563_v18  ;;  %v1564_v39 = vadd.f32 %v1494_v14, %v1434_v16  ;;  %v3999_v56 = vsel %vm3229_vm2, 0, %v1773_v7  ;;  %2083 = vrot.lane.b32.xlu0 %v1992_v10, %s3172_s14  ;;  %v1778_v6 = vshll.u32 %v1692_v43, 16 }
 0x250   : > { %v1366_v40 = vpop.permute.xlu0 %1365  ;;  %v1996_v22 = vshll.u32 %v3999_v56, 16  ;;  %v1994_v57 = vshrl.u32 %v3999_v56, 16  ;;  %v1775_v27 = vshrl.u32 %v1692_v43, 16  ;;  %v2003_v60 = vrot.slane %v2001_v46, 1 }
 0x251   : > { %v1641_v47 = vadd.f32 %v3759_v13, %v1602_v34  ;;  %v1603_v50 = vmul.f32 %v3753_v11, %v1564_v39  ;;  %v1435_v26 = vadd.f32 %v3655_v52, %v1366_v40  ;;  %v2159_v1 = vrot.slane %v3999_v56, 1 }
 0x252   : > { %v1368_v35 = vpop.permute.xlu1 %1367  ;;  %v1998_v59 = vrot.slane %v1996_v22, 1  ;;  %v1777_v52 = vrot.slane %v1775_v27, 7 }
 0x253   : > { %v1642_v15 = vadd.f32 %v3759_v13, %v1603_v50  ;;  %v1565_v23 = vadd.f32 %v1496_v19, %v1435_v26  ;;  %v1436_v3 = vadd.f32 %v3661_v54, %v1368_v35  ;;  %v1673_v45 = vmax.f32 %v1641_v47, 0.0  ;;  %2195 = vrot.lane.b32.xlu0 %v2158_v30, %s3171_s13 }
 0x254   : > { %v1500_v32 = vpop.permute.xlu0 %1499  ;;  %v1999_v63 = vor.u32 %v1998_v59, %v1994_v57  ;;  %v2160_v19 = vrot.slane %v1867_v9, 1  ;;  %v1780_v31 = vor.u32 %v1778_v6, %v1777_v52  ;;  %v1868_v54 = vsel %vm3229_vm2, %v1777_v52, 0 }
 0x255   : > { %v1674_v28 = vmax.f32 %v1642_v15, 0.0  ;;  %v1604_v41 = vmul.f32 %v3753_v11, %v1565_v23  ;;  %v1566_v48 = vadd.f32 %v1498_v17, %v1436_v3  ;;  %v1567_v24 = vadd.f32 %v1500_v32, %v1437_v33 }
 0x256   : > { %v1502_v16 = vpop.permute.xlu1 %1501  ;;  %v2004_v8 = vsel %vm629_vm5, %v1999_v63, %v2003_v60  ;;  %v4025_v38 = vsel %vm3229_vm2, 0, %v1780_v31  ;;  %v2161_v14 = vsel %vm902_vm3, %v2159_v1, %v2160_v19  ;;  %v2013_v29 = vshll.u32 %v1868_v54, 16 }
 0x257   : > { %v1693_v62 = vpack.c.bf16 %v1674_v28, %v1673_v45  ;;  %v1643_v53 = vadd.f32 %v3759_v13, %v1604_v41  ;;  %v1605_v7 = vmul.f32 %v3753_v11, %v1566_v48  ;;  %v1606_v43 = vmul.f32 %v3753_v11, %v1567_v24  ;;  %2085 = vrot.lane.b32.xlu1 %v2004_v8, %s3172_s14 }
 0x258   : > { %v1568_v18 = vadd.f32 %v1502_v16, %v1438_v20  ;;  %v1374_v17 = vpop.permute.xlu0 %1373  ;;  %v2008_v47 = vshll.u32 %v4025_v38, 16  ;;  %v2006_v6 = vshrl.u32 %v4025_v38, 16  ;;  %v2015_v3 = vrot.slane %v2013_v29, 1 }
 0x259   : > { %v1782_v9 = vshrl.u32 %v1693_v62, 16  ;;  %v1644_v44 = vadd.f32 %v3759_v13, %v1605_v7  ;;  %v1785_v34 = vshll.u32 %v1693_v62, 16  ;;  %v1675_v39 = vmax.f32 %v1643_v53, 0.0 }
 0x25a   : > { %v1645_v46 = vadd.f32 %v3759_v13, %v1606_v43  ;;  %v1607_v33 = vmul.f32 %v3753_v11, %v1568_v18  ;;  %v1376_v10 = vpop.permute.xlu1 %1375  ;;  %v1439_v22 = vadd.f32 %v3671_v4, %v1374_v17  ;;  %v2010_v27 = vrot.slane %v2008_v47, 1 }
 0x25b   : > { %v1784_v40 = vrot.slane %v1782_v9, 7  ;;  %v1676_v20 = vmax.f32 %v1644_v44, 0.0  ;;  %2197 = vrot.lane.b32.xlu1 %v2161_v14, %s3171_s13  ;;  %v1440_v26 = vadd.f32 %v3677_v5, %v1376_v10  ;;  %v2162_v4 = vrot.slane %v4025_v38, 1 }
 0x25c   : > { %v1646_v50 = vadd.f32 %v3759_v13, %v1607_v33  ;;  %v1504_v30 = vpop.permute.xlu0 %1503  ;;  %v1677_v15 = vmax.f32 %v1645_v46, 0.0  ;;  %v2011_v32 = vor.u32 %v2010_v27, %v2006_v6  ;;  %v2163_v24 = vrot.slane %v1868_v54, 1 }
 0x25d   : > { %v1787_v35 = vor.u32 %v1785_v34, %v1784_v40  ;;  %v1694_v57 = vpack.c.bf16 %v1676_v20, %v1675_v39  ;;  %v1569_v59 = vadd.f32 %v1504_v30, %v1439_v22  ;;  %v1869_v5 = vsel %vm3229_vm2, %v1784_v40, 0 }
 0x25e   : > { %v1678_v23 = vmax.f32 %v1646_v50, 0.0  ;;  %v1506_v60 = vpop.permute.xlu1 %1505  ;;  %v2016_v41 = vsel %vm629_vm5, %v2011_v32, %v2015_v3  ;;  %v2025_v19 = vshll.u32 %v1869_v5, 16  ;;  %v2164_v62 = vsel %vm902_vm3, %v2162_v4, %v2163_v24 }
 0x25f   : > { %v1608_v45 = vmul.f32 %v3753_v11, %v1569_v59  ;;  %v1570_v63 = vadd.f32 %v1506_v60, %v1440_v26  ;;  %v4043_v52 = vsel %vm3229_vm2, 0, %v1787_v35  ;;  %2087 = vrot.lane.b32.xlu0 %v2016_v41, %s3172_s14  ;;  %v1789_v53 = vshrl.u32 %v1694_v57, 16 }
 0x260   : > { %v1695_v1 = vpack.c.bf16 %v1678_v23, %v1677_v15  ;;  %v2020_v8 = vshll.u32 %v4043_v52, 16  ;;  %v2018_v18 = vshrl.u32 %v4043_v52, 16  ;;  %v1792_v9 = vshll.u32 %v1694_v57, 16 }
 0x261   : > { %v1647_v28 = vadd.f32 %v3759_v13, %v1608_v45  ;;  %v1609_v48 = vmul.f32 %v3753_v11, %v1570_v63  ;;  %v1791_v54 = vrot.slane %v1789_v53, 7  ;;  %v2027_v34 = vrot.slane %v2025_v19, 1 }
 0x262   : > { %v1796_v16 = vshrl.u32 %v1695_v1, 16  ;;  %v1799_v43 = vshll.u32 %v1695_v1, 16  ;;  %v2022_v17 = vrot.slane %v2020_v8, 1  ;;  %v2165_v39 = vrot.slane %v4043_v52, 1 }
 0x263   : > { %v1648_v31 = vadd.f32 %v3759_v13, %v1609_v48  ;;  %v1679_v44 = vmax.f32 %v1647_v28, 0.0  ;;  %2199 = vrot.lane.b32.xlu0 %v2164_v62, %s3171_s13  ;;  %v1794_v46 = vor.u32 %v1792_v9, %v1791_v54  ;;  %v1870_v33 = vsel %vm3229_vm2, %v1791_v54, 0 }
 0x264   : > { %v1798_v7 = vrot.slane %v1796_v16, 7  ;;  %v2023_v29 = vor.u32 %v2022_v17, %v2018_v18  ;;  %v2166_v47 = vrot.slane %v1869_v5, 1  ;;  %v2037_v26 = vshll.u32 %v1870_v33, 16 }
 0x265   : > { %v1680_v11 = vmax.f32 %v1648_v31, 0.0  ;;  %v4067_v50 = vsel %vm3229_vm2, 0, %v1794_v46  ;;  %v2169_v31 = vrot.slane %v1870_v33, 1  ;;  %v2854_v46 = vld [vmem:[%s4423_s7] sm:$0xf] }
 0x266   : > { %v1801_v14 = vor.u32 %v1799_v43, %v1798_v7  ;;  %v1871_v10 = vsel %vm3229_vm2, %v1798_v7, 0  ;;  %v2028_v40 = vsel %vm629_vm5, %v2023_v29, %v2027_v34  ;;  %v2032_v30 = vshll.u32 %v4067_v50, 16 }
 0x267   : > { %v1696_v13 = vpack.c.bf16 %v1680_v11, %v1679_v44  ;;  %2089 = vrot.lane.b32.xlu1 %v2028_v40, %s3172_s14  ;;  %v2049_v35 = vshll.u32 %v1871_v10, 16  ;;  %v2167_v27 = vsel %vm902_vm3, %v2165_v39, %v2166_v47  ;;  %v2030_v15 = vshrl.u32 %v4067_v50, 16  ;;  %v2846_v39 = vld [vmem:[%s4422_s6] sm:$0xf] }
 0x268   : > { %v4062_v20 = vsel %vm3229_vm2, 0, %v1801_v14  ;;  %v2034_v23 = vrot.slane %v2032_v30, 1  ;;  %v2039_v45 = vrot.slane %v2037_v26, 1  ;;  %v2168_v24 = vrot.slane %v4067_v50, 1 }
 0x269   : > { %v1803_v22 = vshrl.u32 %v1696_v13, 16  ;;  %v2044_v6 = vshll.u32 %v4062_v20, 16  ;;  %v1806_v59 = vshll.u32 %v1696_v13, 16  ;;  %v2042_v3 = vshrl.u32 %v4062_v20, 16 }
 0x26a   : > { %v2035_v32 = vor.u32 %v2034_v23, %v2030_v15  ;;  %v2051_v5 = vrot.slane %v2049_v35, 1  ;;  %v2171_v16 = vrot.slane %v4062_v20, 1  ;;  %v2172_v62 = vrot.slane %v1871_v10, 1 }
 0x26b   : > { %v1805_v57 = vrot.slane %v1803_v22, 7  ;;  %v2046_v60 = vrot.slane %v2044_v6, 1  ;;  %2201 = vrot.lane.b32.xlu1 %v2167_v27, %s3171_s13  ;;  %v2170_v7 = vsel %vm902_vm3, %v2168_v24, %v2169_v31 }
 0x26c   : > { %v2040_v41 = vsel %vm629_vm5, %v2035_v32, %v2039_v45  ;;  %v2173_v43 = vsel %vm902_vm3, %v2171_v16, %v2172_v62 }
 0x26d   : > { %v1808_v4 = vor.u32 %v1806_v59, %v1805_v57  ;;  %v2047_v63 = vor.u32 %v2046_v60, %v2042_v3  ;;  %v1872_v1 = vsel %vm3229_vm2, %v1805_v57, 0  ;;  %2091 = vrot.lane.b32.xlu0 %v2040_v41, %s3172_s14 }
 0x26e   : > { %v2061_v19 = vshll.u32 %v1872_v1, 16  ;;  %v2175_v44 = vrot.slane %v1872_v1, 1 }
 0x26f   : > { %v4079_v28 = vsel %vm3229_vm2, 0, %v1808_v4  ;;  %v2052_v48 = vsel %vm629_vm5, %v2047_v63, %v2051_v5 }
 0x270   : > { %2093 = vrot.lane.b32.xlu1 %v2052_v48, %s3172_s14  ;;  %v2056_v8 = vshll.u32 %v4079_v28, 16  ;;  %v2054_v2 = vshrl.u32 %v4079_v28, 16  ;;  %v2174_v18 = vrot.slane %v4079_v28, 1  ;;  %v2063_v9 = vrot.slane %v2061_v19, 1 }
 0x271   : > { %2203 = vrot.lane.b32.xlu0 %v2170_v7, %s3171_s13 }
 0x272   : > { %v2058_v53 = vrot.slane %v2056_v8, 1  ;;  %v2176_v54 = vsel %vm902_vm3, %v2174_v18, %v2175_v44 }
 0x274   : > { %2205 = vrot.lane.b32.xlu1 %v2173_v43, %s3171_s13  ;;  %v2059_v17 = vor.u32 %v2058_v53, %v2054_v2 }
 0x275   : > { %v2178_v29 = vpop.permute.xlu1 %2177 }
 0x276   : > { %v2064_v11 = vsel %vm629_vm5, %v2059_v17, %v2063_v9 }
 0x277   : > { %2095 = vrot.lane.b32.xlu0 %v2064_v11, %s3172_s14 }
 0x278   : > { %2207 = vrot.lane.b32.xlu1 %v2176_v54, %s3171_s13 }
 0x279   : > { %v2066_v14 = vpop.permute.xlu0 %2065 }
 0x27a   : > { %v2210_v34 = vsel %vm988_vm6, %v3787_v25, %v2066_v14 }
 0x27b   : > { %v2242_v13 = vsel %vm1023_vm7, %v2210_v34, %v2178_v29 }
 0x27c   : > { %3091 = vmatmul.mubr.msk.bf16.vlgmr.msra.gmra.mrb[0].mxu1 %vm1065_vm8, %v2242_v13  ;;  %2849 = vperm.xlu1 %3141, %v2846_v39  }
 0x280   : > { %2857 = vperm.xlu1 %3141, %v2854_v46  }
 0x281   : > { %v2068_v33 = vpop.permute.xlu0 %2067 }
 0x282   : > { %v2212_v10 = vsel %vm988_vm6, %v3812_v37, %v2068_v33 }
 0x285   : > { %v2180_v40 = vpop.permute.xlu0 %2179 }
 0x286   : > { %v2244_v25 = vsel %vm1023_vm7, %v2212_v10, %v2180_v40 }
 0x287   : > { %3094 = vmatprep.mubr.msk.bf16.mxu1 %vm1065_vm8, %v2244_v25 }
 0x289   : > { %v2070_v22 = vpop.permute.xlu1 %2069 }
 0x28a   : > { %v2214_v47 = vsel %vm988_vm6, %v3827_v42, %v2070_v22 }
 0x28d   : > { %v2182_v26 = vpop.permute.xlu1 %2181 }
 0x28e   : > { %v2246_v30 = vsel %vm1023_vm7, %v2214_v47, %v2182_v26 }
 0x28f   : > { %3095 = vmatmul.mubr.msk.bf16.gmra.mrb[4].mxu1 %vm1065_vm8, %v2246_v30 }
 0x291   : > { %v2072_v6 = vpop.permute.xlu0 %2071 }
 0x292   : > { %v2216_v35 = vsel %vm988_vm6, %v3854_v58, %v2072_v6 }
 0x295   : > { %v2184_v57 = vpop.permute.xlu0 %2183 }
 0x296   : > { %v2248_v37 = vsel %vm1023_vm7, %v2216_v35, %v2184_v57 }
 0x297   : > { %3098 = vmatprep.mubr.msk.bf16.mxu1 %vm1065_vm8, %v2248_v37 }
 0x299   : > { %v2074_v59 = vpop.permute.xlu1 %2073 }
 0x29a   : > { %v2218_v27 = vsel %vm988_vm6, %v3871_v55, %v2074_v59 }
 0x29d   : > { %v2186_v15 = vpop.permute.xlu1 %2185 }
 0x29e   : > { %v2250_v42 = vsel %vm1023_vm7, %v2218_v27, %v2186_v15 }
 0x29f   : > { %3099 = vmatmul.mubr.msk.bf16.gmra.mrb[8].mxu1 %vm1065_vm8, %v2250_v42 }
 0x2a1   : > { %v2076_v23 = vpop.permute.xlu0 %2075 }
 0x2a2   : > { %v2220_v3 = vsel %vm988_vm6, %v3898_v12, %v2076_v23 }
 0x2a5   : > { %v2188_v60 = vpop.permute.xlu0 %2187 }
 0x2a6   : > { %v2252_v58 = vsel %vm1023_vm7, %v2220_v3, %v2188_v60 }
 0x2a7   : > { %3102 = vmatprep.mubr.msk.bf16.mxu1 %vm1065_vm8, %v2252_v58 }
 0x2a9   : > { %v2078_v4 = vpop.permute.xlu1 %2077 }
 0x2aa   : > { %v2222_v45 = vsel %vm988_vm6, %v3915_v49, %v2078_v4 }
 0x2ad   : > { %v2190_v32 = vpop.permute.xlu1 %2189 }
 0x2ae   : > { %v2254_v55 = vsel %vm1023_vm7, %v2222_v45, %v2190_v32 }
 0x2af   : > { %3103 = vmatmul.mubr.msk.bf16.gmra.mrb[12].mxu1 %vm1065_vm8, %v2254_v55 }
 0x2b1   : > { %v2080_v63 = vpop.permute.xlu0 %2079 }
 0x2b2   : > { %v2224_v5 = vsel %vm988_vm6, %v3942_v61, %v2080_v63 }
 0x2b5   : > { %v2192_v1 = vpop.permute.xlu0 %2191 }
 0x2b6   : > { %v2256_v12 = vsel %vm1023_vm7, %v2224_v5, %v2192_v1 }
 0x2b7   : > { %3106 = vmatprep.mubr.msk.bf16.mxu1 %vm1065_vm8, %v2256_v12 }
 0x2b9   : > { %v2082_v41 = vpop.permute.xlu1 %2081 }
 0x2ba   : > { %v2226_v48 = vsel %vm988_vm6, %v3959_v51, %v2082_v41 }
 0x2bd   : > { %v2194_v24 = vpop.permute.xlu1 %2193 }
 0x2be   : > { %v2258_v49 = vsel %vm1023_vm7, %v2226_v48, %v2194_v24 }
 0x2bf   : > { %3107 = vmatmul.mubr.msk.bf16.gmra.mrb[16].mxu1 %vm1065_vm8, %v2258_v49 }
 0x2c1   : > { %v2084_v16 = vpop.permute.xlu0 %2083 }
 0x2c2   : > { %v2228_v8 = vsel %vm988_vm6, %v3982_v36, %v2084_v16 }
 0x2c5   : > { %v2196_v19 = vpop.permute.xlu0 %2195 }
 0x2c6   : > { %v2260_v61 = vsel %vm1023_vm7, %v2228_v8, %v2196_v19 }
 0x2c7   : > { %3110 = vmatprep.mubr.msk.bf16.mxu1 %vm1065_vm8, %v2260_v61 }
 0x2c9   : > { %v2086_v31 = vpop.permute.xlu1 %2085 }
 0x2ca   : > { %v2230_v62 = vsel %vm988_vm6, %v3999_v56, %v2086_v31 }
 0x2cd   : > { %v2198_v2 = vpop.permute.xlu1 %2197 }
 0x2ce   : > { %v2262_v51 = vsel %vm1023_vm7, %v2230_v62, %v2198_v2 }
 0x2cf   : > { %3111 = vmatmul.mubr.msk.bf16.gmra.mrb[20].mxu1 %vm1065_vm8, %v2262_v51 }
 0x2d1   : > { %v2088_v53 = vpop.permute.xlu0 %2087 }
 0x2d2   : > { %v2232_v7 = vsel %vm988_vm6, %v4025_v38, %v2088_v53 }
 0x2d5   : > { %v2200_v43 = vpop.permute.xlu0 %2199 }
 0x2d6   : > { %v2264_v36 = vsel %vm1023_vm7, %v2232_v7, %v2200_v43 }
 0x2d7   : > { %3114 = vmatprep.mubr.msk.bf16.mxu1 %vm1065_vm8, %v2264_v36 }
 0x2d9   : > { %v2090_v18 = vpop.permute.xlu1 %2089 }
 0x2da   : > { %v2234_v17 = vsel %vm988_vm6, %v4043_v52, %v2090_v18 }
 0x2dd   : > { %v2202_v9 = vpop.permute.xlu1 %2201 }
 0x2de   : > { %v2266_v56 = vsel %vm1023_vm7, %v2234_v17, %v2202_v9 }
 0x2df   : > { %3115 = vmatmul.mubr.msk.bf16.gmra.mrb[24].mxu1 %vm1065_vm8, %v2266_v56  ;;  %v2092_v44 = vpop.permute.xlu0 %2091 }
 0x2e0   : > { %v2236_v54 = vsel %vm988_vm6, %v4067_v50, %v2092_v44 }
 0x2e2   : > { %v2094_v11 = vpop.permute.xlu1 %2093 }
 0x2e3   : > { %v2238_v38 = vsel %vm988_vm6, %v4062_v20, %v2094_v11  ;;  %v2204_v14 = vpop.permute.xlu0 %2203 }
 0x2e4   : > { %v2268_v34 = vsel %vm1023_vm7, %v2236_v54, %v2204_v14 }
 0x2e5   : > { %3118 = vmatprep.mubr.msk.bf16.mxu1 %vm1065_vm8, %v2268_v34 }
 0x2e6   : > { %v2206_v29 = vpop.permute.xlu1 %2205 }
 0x2e7   : > { %v2270_v39 = vsel %vm1023_vm7, %v2238_v38, %v2206_v29 }
 0x2e8   : > { %3119 = vmatmul.mubr.msk.bf16.gmra.mrb[28].mxu1 %vm1065_vm8, %v2270_v39 }
 0x2e9   : > { %v2096_v13 = vpop.permute.xlu0 %2095 }
 0x2ea   : > { %v2208_v52 = vpop.permute.xlu1 %2207  ;;  %v2240_v46 = vsel %vm988_vm6, %v4079_v28, %v2096_v13 }
 0x2eb   : > { %v2272_v50 = vsel %vm1023_vm7, %v2240_v46, %v2208_v52 }
 0x2ec   : > { %3122 = vmatprep.mubr.msk.bf16.mxu1 %vm1065_vm8, %v2272_v50 }
 0x2f0   : > { %3123 = vmatmul.mubr.msk.bf16.gmra.mrb[32].mxu1 %vm1065_vm8, %v3491_v21 }
 0x2fb   : > { %v4336_v49 = vpop.permute.xlu1 %2849 }
 0x2fc   : > { %4432 = vst [vmem:[#allocation3_spill] sm:$0xff] %v4336_v49 }
 0x2ff   : > { %v4344_v19 = vpop.permute.xlu1 %2857 }
 0x300   : > { %4433 = vst [vmem:[#allocation4_spill] sm:$0xff] %v4344_v19 }
 0x34f   : > { %v4170_v20 = vpop.f32.mrb[0].mxu1 }
 0x350   : > { %2524 = vrot.lane.b32.xlu0 %v4170_v20, %s3173_s15  ;;  %v4174_v33 = vpop.f32.mrb[1].mxu1 }
 0x351   : > { %v4176_v10 = vpop.f32.mrb[2].mxu1 }
 0x352   : > { %2526 = vrot.lane.b32.xlu1 %v4176_v10, %s3173_s15  ;;  %v4180_v28 = vpop.f32.mrb[3].mxu1 }
 0x362   : > { %v4182_v40 = vpop.f32.mrb[4].mxu1 }
 0x363   : > { %2532 = vrot.lane.b32.xlu0 %v4182_v40, %s3173_s15  ;;  %v4186_v21 = vpop.f32.mrb[5].mxu1 }
 0x364   : > { %v4188_v25 = vpop.f32.mrb[6].mxu1 }
 0x365   : > { %2534 = vrot.lane.b32.xlu1 %v4188_v25, %s3173_s15  ;;  %v4192_v22 = vpop.f32.mrb[7].mxu1 }
 0x367   : > { %2658 = vrot.lane.b32.xlu0 %v4182_v40, %s3174_s16 }
 0x369   : > { %2660 = vrot.lane.b32.xlu1 %v4188_v25, %s3174_s16 }
 0x36b   : > { %2528 = vrot.lane.b32.xlu0 %v4186_v21, %s3173_s15 }
 0x36d   : > { %2530 = vrot.lane.b32.xlu1 %v4192_v22, %s3173_s15 }
 0x36f   : > { %2654 = vrot.lane.b32.xlu0 %v4186_v21, %s3174_s16 }
 0x371   : > { %2656 = vrot.lane.b32.xlu1 %v4192_v22, %s3174_s16 }
 0x372   : > { %v4206_v47 = vpop.f32.mrb[8].mxu1 }
 0x373   : > { %2540 = vrot.lane.b32.xlu0 %v4206_v47, %s3173_s15  ;;  %v4210_v26 = vpop.f32.mrb[9].mxu1 }
 0x374   : > { %v4212_v30 = vpop.f32.mrb[10].mxu1 }
 0x375   : > { %2542 = vrot.lane.b32.xlu1 %v4212_v30, %s3173_s15  ;;  %v4216_v6 = vpop.f32.mrb[11].mxu1 }
 0x377   : > { %2666 = vrot.lane.b32.xlu0 %v4206_v47, %s3174_s16 }
 0x379   : > { %2668 = vrot.lane.b32.xlu1 %v4212_v30, %s3174_s16 }
 0x37b   : > { %2536 = vrot.lane.b32.xlu0 %v4210_v26, %s3173_s15 }
 0x37d   : > { %2538 = vrot.lane.b32.xlu1 %v4216_v6, %s3173_s15 }
 0x37f   : > { %2662 = vrot.lane.b32.xlu0 %v4210_v26, %s3174_s16 }
 0x381   : > { %2664 = vrot.lane.b32.xlu1 %v4216_v6, %s3174_s16 }
 0x382   : > { %v4230_v35 = vpop.f32.mrb[12].mxu1 }
 0x383   : > { %2548 = vrot.lane.b32.xlu0 %v4230_v35, %s3173_s15  ;;  %v4234_v57 = vpop.f32.mrb[13].mxu1 }
 0x384   : > { %v4236_v37 = vpop.f32.mrb[14].mxu1 }
 0x385   : > { %2550 = vrot.lane.b32.xlu1 %v4236_v37, %s3173_s15  ;;  %v4240_v59 = vpop.f32.mrb[15].mxu1 }
 0x387   : > { %2674 = vrot.lane.b32.xlu0 %v4230_v35, %s3174_s16 }
 0x389   : > { %2676 = vrot.lane.b32.xlu1 %v4236_v37, %s3174_s16 }
 0x38b   : > { %2544 = vrot.lane.b32.xlu0 %v4234_v57, %s3173_s15 }
 0x38d   : > { %2546 = vrot.lane.b32.xlu1 %v4240_v59, %s3173_s15 }
 0x38f   : > { %2670 = vrot.lane.b32.xlu0 %v4234_v57, %s3174_s16 }
 0x391   : > { %2672 = vrot.lane.b32.xlu1 %v4240_v59, %s3174_s16 }
 0x392   : > { %v4254_v27 = vpop.f32.mrb[16].mxu1 }
 0x393   : > { %2556 = vrot.lane.b32.xlu0 %v4254_v27, %s3173_s15  ;;  %v4258_v15 = vpop.f32.mrb[17].mxu1 }
 0x394   : > { %v4260_v42 = vpop.f32.mrb[18].mxu1 }
 0x395   : > { %2558 = vrot.lane.b32.xlu1 %v4260_v42, %s3173_s15  ;;  %v4264_v23 = vpop.f32.mrb[19].mxu1 }
 0x397   : > { %2682 = vrot.lane.b32.xlu0 %v4254_v27, %s3174_s16 }
 0x399   : > { %2684 = vrot.lane.b32.xlu1 %v4260_v42, %s3174_s16 }
 0x39b   : > { %2552 = vrot.lane.b32.xlu0 %v4258_v15, %s3173_s15 }
 0x39d   : > { %2554 = vrot.lane.b32.xlu1 %v4264_v23, %s3173_s15 }
 0x39f   : > { %2678 = vrot.lane.b32.xlu0 %v4258_v15, %s3174_s16 }
 0x3a1   : > { %2680 = vrot.lane.b32.xlu1 %v4264_v23, %s3174_s16 }
 0x3a2   : > { %v4278_v3 = vpop.f32.mrb[20].mxu1 }
 0x3a3   : > { %2564 = vrot.lane.b32.xlu0 %v4278_v3, %s3173_s15  ;;  %v4282_v60 = vpop.f32.mrb[21].mxu1 }
 0x3a4   : > { %v4284_v58 = vpop.f32.mrb[22].mxu1 }
 0x3a5   : > { %2566 = vrot.lane.b32.xlu1 %v4284_v58, %s3173_s15  ;;  %v4288_v4 = vpop.f32.mrb[23].mxu1 }
 0x3a7   : > { %2690 = vrot.lane.b32.xlu0 %v4278_v3, %s3174_s16 }
 0x3a9   : > { %2692 = vrot.lane.b32.xlu1 %v4284_v58, %s3174_s16 }
 0x3ab   : > { %2560 = vrot.lane.b32.xlu0 %v4282_v60, %s3173_s15 }
 0x3ad   : > { %2562 = vrot.lane.b32.xlu1 %v4288_v4, %s3173_s15 }
 0x3af   : > { %2686 = vrot.lane.b32.xlu0 %v4282_v60, %s3174_s16 }
 0x3b1   : > { %2688 = vrot.lane.b32.xlu1 %v4288_v4, %s3174_s16 }
 0x3b2   : > { %v4302_v45 = vpop.f32.mrb[24].mxu1 }
 0x3b3   : > { %2572 = vrot.lane.b32.xlu0 %v4302_v45, %s3173_s15  ;;  %v4306_v32 = vpop.f32.mrb[25].mxu1 }
 0x3b4   : > { %v4308_v55 = vpop.f32.mrb[26].mxu1 }
 0x3b5   : > { %2574 = vrot.lane.b32.xlu1 %v4308_v55, %s3173_s15  ;;  %v4312_v63 = vpop.f32.mrb[27].mxu1 }
 0x3b7   : > { %2698 = vrot.lane.b32.xlu0 %v4302_v45, %s3174_s16 }
 0x3b9   : > { %2700 = vrot.lane.b32.xlu1 %v4308_v55, %s3174_s16 }
 0x3bb   : > { %v4318_v5 = vpop.f32.mrb[28].mxu1  ;;  %2568 = vrot.lane.b32.xlu0 %v4306_v32, %s3173_s15 }
 0x3bc   : > { %v4322_v1 = vpop.f32.mrb[29].mxu1 }
 0x3bd   : > { %v4324_v12 = vpop.f32.mrb[30].mxu1  ;;  %2570 = vrot.lane.b32.xlu1 %v4312_v63, %s3173_s15 }
 0x3be   : > { %4431 = vst [vmem:[#allocation2_spill] sm:$0xff] %v4324_v12  ;;  %v4328_v41 = vpop.f32.mrb[31].mxu1 }
 0x3bf   : > { %2694 = vrot.lane.b32.xlu0 %v4306_v32, %s3174_s16 }
 0x3c1   : > { %2696 = vrot.lane.b32.xlu1 %v4312_v63, %s3174_s16 }
 0x3c2   : > { %v2525_v61 = vpop.permute.xlu0 %2524 }
 0x3c3   : > { %v3124_v48 = vpop.f32.mrb[32].mxu1  ;;  %2580 = vrot.lane.b32.xlu0 %v4318_v5, %s3173_s15  ;;  %v2620_v34 = vadd.f32 %v2525_v61, %v4174_v33 }
 0x3c4   : > { %v2477_v24 = vpop.f32.mrb[33].mxu1  ;;  %v2527_v31 = vpop.permute.xlu1 %2526 }
 0x3c5   : > { %v3125_v16 = vpop.f32.mrb[34].mxu1  ;;  %2582 = vrot.lane.b32.xlu1 %v4324_v12, %s3173_s15  ;;  %v2621_v46 = vadd.f32 %v2527_v31, %v4180_v28 }
 0x3c6   : > { %v2480_v8 = vpop.f32.mrb[35].mxu1 }
 0x3c7   : > { %2706 = vrot.lane.b32.xlu0 %v4318_v5, %s3174_s16 }
 0x3c9   : > { %2708 = vrot.lane.b32.xlu1 %v4324_v12, %s3174_s16 }
 0x3cb   : > { %2576 = vrot.lane.b32.xlu0 %v4322_v1, %s3173_s15 }
 0x3cd   : > { %2578 = vrot.lane.b32.xlu1 %v4328_v41, %s3173_s15 }
 0x3cf   : > { %2702 = vrot.lane.b32.xlu0 %v4322_v1, %s3174_s16 }
 0x3d1   : > { %2704 = vrot.lane.b32.xlu1 %v4328_v41, %s3174_s16 }
 0x3d3   : > { %2714 = vrot.lane.b32.xlu0 %v3124_v48, %s3174_s16 }
 0x3d5   : > { %v2533_v62 = vpop.permute.xlu0 %2532  ;;  %2716 = vrot.lane.b32.xlu1 %v3125_v16, %s3174_s16 }
 0x3d7   : > { %v2535_v2 = vpop.permute.xlu1 %2534  ;;  %2584 = vrot.lane.b32.xlu0 %v2477_v24, %s3173_s15 }
 0x3d9   : > { %v2659_v51 = vpop.permute.xlu0 %2658  ;;  %2586 = vrot.lane.b32.xlu1 %v2480_v8, %s3173_s15 }
 0x3db   : > { %v2661_v53 = vpop.permute.xlu1 %2660  ;;  %2710 = vrot.lane.b32.xlu0 %v2477_v24, %s3174_s16 }
 0x3dd   : > { %v2529_v7 = vpop.permute.xlu0 %2528  ;;  %2712 = vrot.lane.b32.xlu1 %v2480_v8, %s3174_s16 }
 0x3de   : > { %v2622_v48 = vadd.f32 %v4170_v20, %v2529_v7  ;;  %v2625_v20 = vadd.f32 %v2535_v2, %v4192_v22 }
 0x3df   : > { %v2531_v43 = vpop.permute.xlu1 %2530 }
 0x3e0   : > { %v2752_v0 = vadd.f32 %v2659_v51, %v2622_v48  ;;  %v2623_v19 = vadd.f32 %v4176_v10, %v2531_v43 }
 0x3e1   : > { %v2655_v36 = vpop.permute.xlu0 %2654 }
 0x3e2   : > { %v2750_v52 = vadd.f32 %v2655_v36, %v2620_v34  ;;  %v2753_v61 = vadd.f32 %v2661_v53, %v2623_v19  ;;  %v2624_v36 = vadd.f32 %v2533_v62, %v4186_v21 }
 0x3e3   : > { %v2657_v18 = vpop.permute.xlu1 %2656 }
 0x3e4   : > { %v2751_v24 = vadd.f32 %v2657_v18, %v2621_v46 }
 0x3e5   : > { %v2541_v17 = vpop.permute.xlu0 %2540 }
 0x3e7   : > { %v2543_v9 = vpop.permute.xlu1 %2542 }
 0x3e9   : > { %v2667_v56 = vpop.permute.xlu0 %2666 }
 0x3eb   : > { %v2669_v44 = vpop.permute.xlu1 %2668 }
 0x3ed   : > { %v2537_v11 = vpop.permute.xlu0 %2536 }
 0x3ee   : > { %v2626_v51 = vadd.f32 %v4182_v40, %v2537_v11  ;;  %v2629_v40 = vadd.f32 %v2543_v9, %v4216_v6 }
 0x3ef   : > { %v2539_v54 = vpop.permute.xlu1 %2538 }
 0x3f0   : > { %v2756_v43 = vadd.f32 %v2667_v56, %v2626_v51  ;;  %v2627_v19 = vadd.f32 %v4188_v25, %v2539_v54 }
 0x3f1   : > { %v2663_v38 = vpop.permute.xlu0 %2662 }
 0x3f2   : > { %v2754_v31 = vadd.f32 %v2663_v38, %v2624_v36  ;;  %v2757_v62 = vadd.f32 %v2669_v44, %v2627_v19 }
 0x3f3   : > { %v2665_v14 = vpop.permute.xlu1 %2664 }
 0x3f4   : > { %v2755_v18 = vadd.f32 %v2665_v14, %v2625_v20 }
 0x3f5   : > { %v4360_v29 = vpop.permute.xlu0 %2548 }
 0x3f7   : > { %v4363_v39 = vpop.permute.xlu1 %2550 }
 0x3f9   : > { %v2675_v13 = vpop.permute.xlu0 %2674  ;;  %2782 = vxpose.xlu0.b32.start [1/16] (narrow) %v2750_v52, 8  ;;  %v2628_v52 = vadd.f32 %v2541_v17, %v4210_v26 }
 0x3fb   : > { %v2677_v50 = vpop.permute.xlu1 %2676 }
 0x3fd   : > { %v2545_v16 = vpop.permute.xlu0 %2544  ;;  %2783 = vxpose.xlu0.b32.cont [2/16] (narrow) %v2751_v24, 8 }
 0x3fe   : > { %v2630_v14 = vadd.f32 %v4206_v47, %v2545_v16  ;;  %v2632_v16 = vadd.f32 %v4360_v29, %v4234_v57 }
 0x3ff   : > { %v2547_v8 = vpop.permute.xlu1 %2546 }
 0x400   : > { %v2760_v44 = vadd.f32 %v2675_v13, %v2630_v14  ;;  %v2631_v24 = vadd.f32 %v4212_v30, %v2547_v8  ;;  %v2633_v8 = vadd.f32 %v4363_v39, %v4240_v59 }
 0x401   : > { %v2671_v49 = vpop.permute.xlu0 %2670  ;;  %2784 = vxpose.xlu0.b32.cont [3/16] (narrow) %v2752_v0, 8 }
 0x402   : > { %v2758_v2 = vadd.f32 %v2671_v49, %v2628_v52  ;;  %v2761_v6 = vadd.f32 %v2677_v50, %v2631_v24 }
 0x403   : > { %v2673_v33 = vpop.permute.xlu1 %2672 }
 0x404   : > { %v2759_v56 = vadd.f32 %v2673_v33, %v2629_v40 }
 0x405   : > { %v2557_v12 = vpop.permute.xlu0 %2556  ;;  %2785 = vxpose.xlu0.b32.cont [4/16] (narrow) %v2753_v61, 8 }
 0x406   : > { %v2636_v54 = vadd.f32 %v2557_v12, %v4258_v15 }
 0x407   : > { %v2559_v28 = vpop.permute.xlu1 %2558 }
 0x408   : > { %v2637_v61 = vadd.f32 %v2559_v28, %v4264_v23 }
 0x409   : > { %v2683_v34 = vpop.permute.xlu0 %2682  ;;  %2786 = vxpose.xlu0.b32.cont [5/16] (narrow) %v2754_v31, 8 }
 0x40b   : > { %v4370_v7 = vpop.permute.xlu1 %2684 }
 0x40d   : > { %v2553_v10 = vpop.permute.xlu0 %2552  ;;  %2787 = vxpose.xlu0.b32.cont [6/16] (narrow) %v2755_v18, 8 }
 0x40f   : > { %v2555_v0 = vpop.permute.xlu1 %2554 }
 0x410   : > { %v2635_v31 = vadd.f32 %v4236_v37, %v2555_v0 }
 0x411   : > { %v2679_v53 = vpop.permute.xlu0 %2678  ;;  %2788 = vxpose.xlu0.b32.cont [7/16] (narrow) %v2756_v43, 8 }
 0x412   : > { %v2762_v15 = vadd.f32 %v2679_v53, %v2632_v16  ;;  %v2765_v39 = vadd.f32 %v4370_v7, %v2635_v31  ;;  %v4437_v16 = vld [vmem:[#allocation4_spill] sm:$0xff] }
 0x413   : > { %v2681_v21 = vpop.permute.xlu1 %2680 }
 0x414   : > { %v2763_v50 = vadd.f32 %v2681_v21, %v2633_v8 }
 0x415   : > { %v2565_v38 = vpop.permute.xlu0 %2564  ;;  %2789 = vxpose.xlu0.b32.cont [8/16] (narrow) %v2757_v62, 8 }
 0x417   : > { %v2567_v22 = vpop.permute.xlu1 %2566 }
 0x419   : > { %v2691_v46 = vpop.permute.xlu0 %2690  ;;  %2790 = vxpose.xlu0.b32.cont [9/16] (narrow) %v2758_v2, 8 }
 0x41b   : > { %v2693_v11 = vpop.permute.xlu1 %2692 }
 0x41d   : > { %v2561_v48 = vpop.permute.xlu0 %2560  ;;  %2791 = vxpose.xlu0.b32.cont [10/16] (narrow) %v2759_v56, 8 }
 0x41e   : > { %v2638_v9 = vadd.f32 %v4254_v27, %v2561_v48  ;;  %v2634_v27 = vadd.f32 %v4230_v35, %v2553_v10  ;;  %v2641_v35 = vadd.f32 %v2567_v22, %v4288_v4 }
 0x41f   : > { %v2563_v25 = vpop.permute.xlu1 %2562 }
 0x420   : > { %v2768_v30 = vadd.f32 %v2691_v46, %v2638_v9  ;;  %v2639_v13 = vadd.f32 %v4260_v42, %v2563_v25  ;;  %v2764_v29 = vadd.f32 %v2683_v34, %v2634_v27  ;;  %v2640_v42 = vadd.f32 %v2565_v38, %v4282_v60 }
 0x421   : > { %v2687_v26 = vpop.permute.xlu0 %2686  ;;  %2792 = vxpose.xlu0.b32.cont [11/16] (narrow) %v2760_v44, 8 }
 0x422   : > { %v2766_v17 = vadd.f32 %v2687_v26, %v2636_v54  ;;  %v2769_v28 = vadd.f32 %v2693_v11, %v2639_v13 }
 0x423   : > { %v2689_v49 = vpop.permute.xlu1 %2688 }
 0x424   : > { %2814 = vxpose.xlu1.b32.start [1/16] (narrow) %v2766_v17, 8  ;;  %v2767_v47 = vadd.f32 %v2689_v49, %v2637_v61  ;;  %v4434_v49 = vld [vmem:[#allocation2_spill] sm:$0xff] }
 0x425   : > { %2793 = vxpose.xlu0.b32.cont [12/16] (narrow) %v2761_v6, 8  ;;  %v2573_v33 = vpop.permute.xlu0 %2572  ;;  %v4435_v6 = vmov 0  }
 0x426   : > { %v2644_v38 = vadd.f32 %v2573_v33, %v4306_v32 }
 0x427   : > { %v2575_v12 = vpop.permute.xlu1 %2574 }
 0x428   : > { %2815 = vxpose.xlu1.b32.cont [2/16] (narrow) %v2767_v47, 8  ;;  %v2862_v47 = vld [vmem:[%s320_s10] sm:$0xff] }
 0x429   : > { %2794 = vxpose.xlu0.b32.cont [13/16] (narrow) %v2762_v15, 8  ;;  %v2699_v23 = vpop.permute.xlu0 %2698  ;;  %v2864_v15 = vcombine.high %v2862_v47, %v2862_v47 }
 0x42b   : > { %v2701_v36 = vpop.permute.xlu1 %2700 }
 0x42c   : > { %2816 = vxpose.xlu1.b32.cont [3/16] (narrow) %v2768_v30, 8 }
 0x42d   : > { %2795 = vxpose.xlu0.b32.cont [14/16] (narrow) %v2763_v50, 8  ;;  %v2569_v57 = vpop.permute.xlu0 %2568 }
 0x42e   : > { %v2642_v43 = vadd.f32 %v4278_v3, %v2569_v57  ;;  %v2645_v3 = vadd.f32 %v2575_v12, %v4312_v63 }
 0x42f   : > { %v2571_v20 = vpop.permute.xlu1 %2570 }
 0x430   : > { %2817 = vxpose.xlu1.b32.cont [4/16] (narrow) %v2769_v28, 8  ;;  %v2772_v0 = vadd.f32 %v2699_v23, %v2642_v43  ;;  %v2643_v60 = vadd.f32 %v4284_v58, %v2571_v20 }
 0x431   : > { %2796 = vxpose.xlu0.b32.cont [15/16] (narrow) %v2764_v29, 8  ;;  %v2695_v51 = vpop.permute.xlu0 %2694 }
 0x432   : > { %v2770_v59 = vadd.f32 %v2695_v51, %v2640_v42  ;;  %v2773_v62 = vadd.f32 %v2701_v36, %v2643_v60 }
 0x433   : > { %v2697_v18 = vpop.permute.xlu1 %2696 }
 0x434   : > { %2818 = vxpose.xlu1.b32.cont [5/16] (narrow) %v2770_v59, 8  ;;  %v2771_v19 = vadd.f32 %v2697_v18, %v2641_v35 }
 0x435   : > { %2797 = vxpose.xlu0.b32.end [16/16] (narrow) %v2765_v39, 8  ;;  %v2581_v10 = vpop.permute.xlu0 %2580 }
 0x436   : > { %v2648_v54 = vadd.f32 %v2581_v10, %v4322_v1 }
 0x437   : > { %v2583_v34 = vpop.permute.xlu1 %2582 }
 0x438   : > { %2819 = vxpose.xlu1.b32.cont [6/16] (narrow) %v2771_v19, 8  ;;  %v2649_v24 = vadd.f32 %v2583_v34, %v4328_v41  ;;  %v4436_v41 = vld [vmem:[#allocation3_spill] sm:$0xff] }
 0x439   : > { %v2707_v37 = vpop.permute.xlu0 %2706 }
 0x43b   : > { %v2709_v53 = vpop.permute.xlu1 %2708 }
 0x43c   : > { %2820 = vxpose.xlu1.b32.cont [7/16] (narrow) %v2772_v0, 8 }
 0x43d   : > { %v2577_v21 = vpop.permute.xlu0 %2576 }
 0x43e   : > { %v2646_v46 = vadd.f32 %v4302_v45, %v2577_v21 }
 0x43f   : > { %v2579_v7 = vpop.permute.xlu1 %2578 }
 0x440   : > { %2821 = vxpose.xlu1.b32.cont [8/16] (narrow) %v2773_v62, 8  ;;  %v2776_v14 = vadd.f32 %v2707_v37, %v2646_v46  ;;  %v2647_v56 = vadd.f32 %v4308_v55, %v2579_v7 }
 0x441   : > { %v2703_v4 = vpop.permute.xlu0 %2702 }
 0x442   : > { %v2774_v52 = vadd.f32 %v2703_v4, %v2644_v38  ;;  %v2777_v32 = vadd.f32 %v2709_v53, %v2647_v56 }
 0x443   : > { %v2705_v22 = vpop.permute.xlu1 %2704 }
 0x444   : > { %2822 = vxpose.xlu1.b32.cont [9/16] (narrow) %v2774_v52, 8  ;;  %v2775_v40 = vadd.f32 %v2705_v22, %v2645_v3 }
 0x445   : > { %v2715_v2 = vpop.permute.xlu0 %2714 }
 0x447   : > { %v2717_v11 = vpop.permute.xlu1 %2716 }
 0x448   : > { %2823 = vxpose.xlu1.b32.cont [10/16] (narrow) %v2775_v40, 8 }
 0x449   : > { %v2585_v58 = vpop.permute.xlu0 %2584 }
 0x44a   : > { %v2650_v45 = vadd.f32 %v4318_v5, %v2585_v58 }
 0x44b   : > { %v2587_v48 = vpop.permute.xlu1 %2586 }
 0x44c   : > { %2824 = vxpose.xlu1.b32.cont [11/16] (narrow) %v2776_v14, 8  ;;  %v2780_v17 = vadd.f32 %v2715_v2, %v2650_v45  ;;  %v2651_v55 = vadd.f32 %v4434_v49, %v2587_v48 }
 0x44d   : > { %v2711_v25 = vpop.permute.xlu0 %2710 }
 0x44e   : > { %v2778_v63 = vadd.f32 %v2711_v25, %v2648_v54  ;;  %v2781_v61 = vadd.f32 %v2717_v11, %v2651_v55 }
 0x44f   : > { %v2713_v44 = vpop.permute.xlu1 %2712 }
 0x450   : > { %2825 = vxpose.xlu1.b32.cont [12/16] (narrow) %v2777_v32, 8  ;;  %v2779_v26 = vadd.f32 %v2713_v44, %v2649_v24 }
 0x454   : > { %2826 = vxpose.xlu1.b32.cont [13/16] (narrow) %v2778_v63, 8 }
 0x458   : > { %2827 = vxpose.xlu1.b32.cont [14/16] (narrow) %v2779_v26, 8 }
 0x45c   : > { %2828 = vxpose.xlu1.b32.cont [15/16] (narrow) %v2780_v17, 8 }
 0x45e   : > { %3142 = vset.pattern.permute.xlu0 %v4435_v6 }
 0x460   : > { %2829 = vxpose.xlu1.b32.end [16/16] (narrow) %v2781_v61, 8 }
 0x479   : > { %v2798_v1 = vpop.trf.xlu0 }
 0x47a   : > { %v2852_v9 = vmul.f32 %v4436_v41, %v2798_v1 }
 0x47c   : > { %v2860_v33 = vadd.f32 %v4437_v16, %v2852_v9 }
 0x47e   : > { %v2866_v13 = vadd.f32 %v2862_v47, %v2860_v33 }
 0x4a4   : > { %v2830_v5 = vpop.trf.xlu1 }
 0x4a5   : > { %v2853_v12 = vmul.f32 %v4436_v41, %v2830_v5 }
 0x4a7   : > { %v2861_v30 = vadd.f32 %v4437_v16, %v2853_v12 }
 0x4a9   : > { %v2867_v8 = vadd.f32 %v2864_v15, %v2861_v30 }
 0x4ab   : > { %v2870_v23 = vcombine.low %v2866_v13, %v2867_v8 }
 0x4ad   : > { %2872 = vst [vmem:[%s325_s12] sm:$0xff] %v2870_v23 }
 0x4ae PF: > { %s18_s27 = sadd.s32 1, %s3168_s27  }
 0x4af   : > { %p15_p4 = scmp.ge.s32.totalorder %s18_s27, 4  }
 0x4b1   :  { %17 = sbr.rel (!%p15_p4) target bundleno = 1 (0x1), region = 85 }

</bundles_post_ra>
